<compile_context>
chip_gen: v6e
topology: v6e:2x2x1
jax: 0.10.0
libtpu: 0.0.40
codegen_flags: <defaults>
</compile_context>

<pallas_src>
import functools

import jax
import jax.numpy as jnp
from jax.experimental import pallas as pl
from jax.experimental.pallas import tpu as pltpu

IN_DIM = 63      # positional-encoding input width of the module
HID = 256
OUT_DIM = 32     # final output width (true lane width, masked store)
NEG_SLOPE = 0.2


def _leaky_relu(x):
    return jnp.where(x > 0, x, NEG_SLOPE * x)


def _round_up(n, m):
    return ((n + m - 1) // m) * m


def _pick_tile(n, tm):
    """Batch tile: multiple of 128, <= tm, and small enough that mid-size
    batches still produce >=2 grid steps (v7x megacore) and at most one
    tile's worth of row padding."""
    half = _round_up(max((n + 1) // 2, 1), 128)
    return max(128, min(tm, half))


def _vmem_limit_bytes():
    """~48 MiB on 64-MiB parts (v7x), up to 96 MiB on 128-MiB parts (v5e/v6e)."""
    try:
        cap = int(getattr(pltpu.get_tpu_info(), "vmem_capacity_bytes", 64 << 20))
    except Exception:  # pragma: no cover - conservative fallback
        cap = 64 << 20
    return int(min(96 << 20, cap * 3 // 4))


def encoder_kernel(x_ref,
                   w0_ref, b0_ref,
                   w1_ref, b1_ref,
                   w2_ref, b2_ref,
                   w3_ref, b3_ref,
                   x0_ref, x1_ref, x2_ref, x3_ref):
    # bf16 operands for the MXU, f32 accumulation, f32 bias + activation.
    x = x_ref[...].astype(jnp.bfloat16)                           # (tm, 63)

    h0 = jnp.dot(x, w0_ref[...], preferred_element_type=jnp.float32)
    h0 = _leaky_relu(h0 + b0_ref[...])                            # (tm, 256) f32
    x0_ref[...] = h0.astype(x0_ref.dtype)

    h1 = jnp.dot(h0.astype(jnp.bfloat16), w1_ref[...],
                 preferred_element_type=jnp.float32)
    h1 = _leaky_relu(h1 + b1_ref[...])
    x1_ref[...] = h1.astype(x1_ref.dtype)

    h2 = jnp.dot(h1.astype(jnp.bfloat16), w2_ref[...],
                 preferred_element_type=jnp.float32)
    h2 = _leaky_relu(h2 + b2_ref[...])
    x2_ref[...] = h2.astype(x2_ref.dtype)

    h3 = jnp.dot(h2.astype(jnp.bfloat16), w3_ref[...],
                 preferred_element_type=jnp.float32)
    x3_ref[...] = (h3 + b3_ref[...]).astype(x3_ref.dtype)         # (tm, 32)


def encoder_kernel_x3_only(x_ref,
                           w0_ref, b0_ref,
                           w1_ref, b1_ref,
                           w2_ref, b2_ref,
                           w3_ref, b3_ref,
                           x3_ref):
    # Same math, but skips the x0/x1/x2 HBM writebacks (~80% of the traffic).
    x = x_ref[...].astype(jnp.bfloat16)
    h0 = _leaky_relu(jnp.dot(x, w0_ref[...],
                             preferred_element_type=jnp.float32) + b0_ref[...])
    h1 = _leaky_relu(jnp.dot(h0.astype(jnp.bfloat16), w1_ref[...],
                             preferred_element_type=jnp.float32) + b1_ref[...])
    h2 = _leaky_relu(jnp.dot(h1.astype(jnp.bfloat16), w2_ref[...],
                             preferred_element_type=jnp.float32) + b2_ref[...])
    h3 = jnp.dot(h2.astype(jnp.bfloat16), w3_ref[...],
                 preferred_element_type=jnp.float32)
    x3_ref[...] = (h3 + b3_ref[...]).astype(x3_ref.dtype)


@functools.partial(
    jax.jit,
    static_argnames=("tm", "intermediates_dtype", "return_intermediates"))
def encoder_forward(x, kparams, *, tm=1024,
                    intermediates_dtype=jnp.float32,
                    return_intermediates=True):
    """x: [N, 63] f32.  kparams: prepare_params() output (bf16 weights, f32 biases).

    Returns (x0, x1, x2, x3) matching the PyTorch Encoder.forward.
    intermediates_dtype=bf16 halves the dominant HBM writeback;
    return_intermediates=False skips it entirely (returns (None,None,None,x3))."""
    N = x.shape[0]
    tm_eff = _pick_tile(N, tm)
    n_pad = _round_up(N, tm_eff)
    grid = (n_pad // tm_eff,)

    # Pad batch rows only when needed; the K=63 feature dim is passed as-is.
    xp = x if n_pad == N else jnp.pad(x, ((0, n_pad - N), (0, 0)))

    # Weights/biases: one full block each, resident across grid steps.
    full = lambda shape: pl.BlockSpec(shape, lambda i: (0, 0))
    in_specs = [
        pl.BlockSpec((tm_eff, IN_DIM), lambda i: (i, 0)),
        full((IN_DIM, HID)), full((1, HID)),
        full((HID, HID)), full((1, HID)),
        full((HID, HID)), full((1, HID)),
        full((HID, OUT_DIM)), full((1, OUT_DIM)),
    ]
    args = (xp,
            kparams["w0"], kparams["b0"],
            kparams["w1"], kparams["b1"],
            kparams["w2"], kparams["b2"],
            kparams["w3"], kparams["b3"])

    cparams = pltpu.CompilerParams(
        dimension_semantics=("parallel",),
        vmem_limit_bytes=_vmem_limit_bytes(),
    )

    if return_intermediates:
        out_shapes = (
            jax.ShapeDtypeStruct((n_pad, HID), intermediates_dtype),
            jax.ShapeDtypeStruct((n_pad, HID), intermediates_dtype),
            jax.ShapeDtypeStruct((n_pad, HID), intermediates_dtype),
            jax.ShapeDtypeStruct((n_pad, OUT_DIM), jnp.float32),
        )
        out_specs = (
            pl.BlockSpec((tm_eff, HID), lambda i: (i, 0)),
            pl.BlockSpec((tm_eff, HID), lambda i: (i, 0)),
            pl.BlockSpec((tm_eff, HID), lambda i: (i, 0)),
            pl.BlockSpec((tm_eff, OUT_DIM), lambda i: (i, 0)),
        )
        x0, x1, x2, x3 = pl.pallas_call(
            encoder_kernel,
            out_shape=out_shapes,
            grid_spec=pltpu.PrefetchScalarGridSpec(
                num_scalar_prefetch=0, grid=grid,
                in_specs=in_specs, out_specs=out_specs),
            compiler_params=cparams,
        )(*args)
        return x0[:N], x1[:N], x2[:N], x3[:N]

    x3 = pl.pallas_call(
        encoder_kernel_x3_only,
        out_shape=jax.ShapeDtypeStruct((n_pad, OUT_DIM), jnp.float32),
        grid_spec=pltpu.PrefetchScalarGridSpec(
            num_scalar_prefetch=0, grid=grid,
            in_specs=in_specs,
            out_specs=pl.BlockSpec((tm_eff, OUT_DIM), lambda i: (i, 0))),
        compiler_params=cparams,
    )(*args)
    return None, None, None, x3[:N]


def init_params(key):
    """Deterministic init matching nn.Linear's U(-1/sqrt(fan_in), 1/sqrt(fan_in)).

    Stored as [in_features, out_features] f32 (transposed from PyTorch's
    [out, in] convention)."""
    dims = [(IN_DIM, HID), (HID, HID), (HID, HID), (HID, OUT_DIM)]
    params = {}
    keys = jax.random.split(key, 2 * len(dims))
    for i, (fin, fout) in enumerate(dims):
        bound = 1.0 / jnp.sqrt(jnp.float32(fin))
        params[f"w{i}"] = jax.random.uniform(keys[2 * i], (fin, fout),
                                             jnp.float32, minval=-bound, maxval=bound)
        params[f"b{i}"] = jax.random.uniform(keys[2 * i + 1], (1, fout),
                                             jnp.float32, minval=-bound, maxval=bound)
    return params


def prepare_params(params):
    """One-time (outside jit) cast of the MXU-operand weights to bf16.
    Biases stay f32 (bias add + LeakyReLU run in f32 on the VPU)."""
    out = {}
    for i in range(4):
        out[f"w{i}"] = params[f"w{i}"].astype(jnp.bfloat16)
        out[f"b{i}"] = params[f"b{i}"].astype(jnp.float32)
    return out


def reference_forward_f32(x, params):
    """Plain-JAX f32 reference of Encoder.forward."""
    h0 = _leaky_relu(x @ params["w0"] + params["b0"])
    h1 = _leaky_relu(h0 @ params["w1"] + params["b1"])
    h2 = _leaky_relu(h1 @ params["w2"] + params["b2"])
    h3 = h2 @ params["w3"] + params["b3"]
    return h0, h1, h2, h3


def reference_forward_matched(x, params):
    """Reference mirroring the kernel's numerics (bf16 operands, f32 acc)."""
    def lin(h, w, b):
        return jnp.dot(h.astype(jnp.bfloat16), w.astype(jnp.bfloat16),
                       preferred_element_type=jnp.float32) + b
    h0 = _leaky_relu(lin(x, params["w0"], params["b0"]))
    h1 = _leaky_relu(lin(h0, params["w1"], params["b1"]))
    h2 = _leaky_relu(lin(h1, params["w2"], params["b2"]))
    h3 = lin(h2, params["w3"], params["b3"])
    return h0, h1, h2, h3


if __name__ == "__main__":
    key = jax.random.PRNGKey(0)
    k_x, k_p = jax.random.split(key)

    N = 256  # batch of points (ray samples), 63-dim positional encoding
    x = jax.random.normal(k_x, (N, IN_DIM), dtype=jnp.float32)
    params = init_params(k_p)
    kparams = jax.block_until_ready(prepare_params(params))  # cast once, reuse

    refs_m = reference_forward_matched(x, params)
    refs_f = reference_forward_f32(x, params)

    # Default path: f32 intermediates, exact PyTorch return structure.
    outs = jax.block_until_ready(encoder_forward(x, kparams))
    for o, rm, rf in zip(outs, refs_m, refs_f):
        assert o.shape == rf.shape and o.dtype == jnp.float32
        scale_m = jnp.maximum(jnp.max(jnp.abs(rm)), 1e-6)
        assert jnp.max(jnp.abs(o - rm)) / scale_m < 1e-2, "mismatch vs bf16 reference"
        scale_f = jnp.maximum(jnp.max(jnp.abs(rf)), 1e-6)
        assert jnp.max(jnp.abs(o - rf)) / scale_f < 1e-1, "mismatch vs f32 reference"

    # bf16-intermediate path (halves the dominant HBM writeback).
    outs_bf = jax.block_until_ready(
        encoder_forward(x, kparams, intermediates_dtype=jnp.bfloat16))
    for o, rm in zip(outs_bf, refs_m):
        o32 = o.astype(jnp.float32)
        scale_m = jnp.maximum(jnp.max(jnp.abs(rm)), 1e-6)
        assert jnp.max(jnp.abs(o32 - rm)) / scale_m < 2e-2, "bf16-intermediate mismatch"

    # x3-only path (skips intermediate writebacks entirely).
    res = encoder_forward(x, kparams, return_intermediates=False)
    x3_only = jax.block_until_ready(res[3])
    scale = jnp.maximum(jnp.max(jnp.abs(refs_m[3])), 1e-6)
    assert jnp.max(jnp.abs(x3_only - refs_m[3])) / scale < 1e-2, "x3-only mismatch"

    print("KERNEL_OK")
</pallas_src>

<mosaic_0001>
module attributes {stable_mosaic.version = 11 : i64} {
  func.func @encoder_kernel(%arg0: i32, %arg1: memref<128x63xf32, #tpu.memory_space<vmem>>, %arg2: memref<63x256xbf16, #tpu.memory_space<vmem>>, %arg3: memref<1x256xf32, #tpu.memory_space<vmem>>, %arg4: memref<256x256xbf16, #tpu.memory_space<vmem>>, %arg5: memref<1x256xf32, #tpu.memory_space<vmem>>, %arg6: memref<256x256xbf16, #tpu.memory_space<vmem>>, %arg7: memref<1x256xf32, #tpu.memory_space<vmem>>, %arg8: memref<256x32xbf16, #tpu.memory_space<vmem>>, %arg9: memref<1x32xf32, #tpu.memory_space<vmem>>, %arg10: memref<128x256xf32, #tpu.memory_space<vmem>>, %arg11: memref<128x256xf32, #tpu.memory_space<vmem>>, %arg12: memref<128x256xf32, #tpu.memory_space<vmem>>, %arg13: memref<128x32xf32, #tpu.memory_space<vmem>>) attributes {dimension_semantics = [#tpu.dimension_semantics<parallel>], iteration_bounds = array<i64: 2>, scalar_prefetch = 0 : i64, scratch_operands = 0 : i64, tpu.core_type = #tpu.core_type<tc>, window_params = [{transform_indices = @transform_0, window_bounds = array<i64: 128, 63>}, {pipeline_mode = #tpu.pipeline_mode<synchronous>, transform_indices = @transform_1, window_bounds = array<i64: 63, 256>}, {pipeline_mode = #tpu.pipeline_mode<synchronous>, transform_indices = @transform_2, window_bounds = array<i64: 1, 256>}, {pipeline_mode = #tpu.pipeline_mode<synchronous>, transform_indices = @transform_3, window_bounds = array<i64: 256, 256>}, {pipeline_mode = #tpu.pipeline_mode<synchronous>, transform_indices = @transform_4, window_bounds = array<i64: 1, 256>}, {pipeline_mode = #tpu.pipeline_mode<synchronous>, transform_indices = @transform_5, window_bounds = array<i64: 256, 256>}, {pipeline_mode = #tpu.pipeline_mode<synchronous>, transform_indices = @transform_6, window_bounds = array<i64: 1, 256>}, {pipeline_mode = #tpu.pipeline_mode<synchronous>, transform_indices = @transform_7, window_bounds = array<i64: 256, 32>}, {pipeline_mode = #tpu.pipeline_mode<synchronous>, transform_indices = @transform_8, window_bounds = array<i64: 1, 32>}, {transform_indices = @transform_9, window_bounds = array<i64: 128, 256>}, {transform_indices = @transform_10, window_bounds = array<i64: 128, 256>}, {transform_indices = @transform_11, window_bounds = array<i64: 128, 256>}, {transform_indices = @transform_12, window_bounds = array<i64: 128, 32>}]} {
    %c0 = arith.constant 0 : index
    %c0_0 = arith.constant 0 : index
    %0 = vector.load %arg1[%c0, %c0_0] : memref<128x63xf32, #tpu.memory_space<vmem>>, vector<128x63xf32>
    %1 = arith.truncf %0 : vector<128x63xf32> to vector<128x63xbf16>
    %c0_1 = arith.constant 0 : index
    %c0_2 = arith.constant 0 : index
    %2 = vector.load %arg2[%c0_1, %c0_2] : memref<63x256xbf16, #tpu.memory_space<vmem>>, vector<63x256xbf16>
    %cst = arith.constant dense<0.000000e+00> : vector<128x256xf32>
    %3 = tpu.matmul %1, %2, %cst {dimension_numbers = #tpu.dot_dimension_numbers<[1], [0], [0], [1], [0, 0, 1, 1], [], []>} : vector<128x63xbf16>, vector<63x256xbf16>, vector<128x256xf32> -> vector<128x256xf32>
    %c0_3 = arith.constant 0 : index
    %c0_4 = arith.constant 0 : index
    %4 = vector.load %arg3[%c0_3, %c0_4] : memref<1x256xf32, #tpu.memory_space<vmem>>, vector<1x256xf32>
    %5 = vector.broadcast %4 : vector<1x256xf32> to vector<128x256xf32>
    %6 = arith.addf %3, %5 : vector<128x256xf32>
    %cst_5 = arith.constant 0.000000e+00 : f32
    %7 = vector.broadcast %cst_5 : f32 to vector<128x256xf32>
    %8 = arith.cmpf ogt, %6, %7 : vector<128x256xf32>
    %cst_6 = arith.constant 2.000000e-01 : f32
    %9 = vector.broadcast %cst_6 : f32 to vector<128x256xf32>
    %10 = arith.mulf %9, %6 : vector<128x256xf32>
    %11 = arith.select %8, %6, %10 : vector<128x256xi1>, vector<128x256xf32>
    %c0_7 = arith.constant 0 : index
    %c0_8 = arith.constant 0 : index
    %12 = vector.load %arg10[%c0_7, %c0_8] : memref<128x256xf32, #tpu.memory_space<vmem>>, vector<128x256xf32>
    tpu.vector_store %arg10[%c0_7, %c0_8], %11 {strides = array<i32>} : memref<128x256xf32, #tpu.memory_space<vmem>>, vector<128x256xf32>,
    %13 = arith.truncf %11 : vector<128x256xf32> to vector<128x256xbf16>
    %c0_9 = arith.constant 0 : index
    %c0_10 = arith.constant 0 : index
    %14 = vector.load %arg4[%c0_9, %c0_10] : memref<256x256xbf16, #tpu.memory_space<vmem>>, vector<256x256xbf16>
    %cst_11 = arith.constant dense<0.000000e+00> : vector<128x256xf32>
    %15 = tpu.matmul %13, %14, %cst_11 {dimension_numbers = #tpu.dot_dimension_numbers<[1], [0], [0], [1], [0, 0, 1, 1], [], []>} : vector<128x256xbf16>, vector<256x256xbf16>, vector<128x256xf32> -> vector<128x256xf32>
    %c0_12 = arith.constant 0 : index
    %c0_13 = arith.constant 0 : index
    %16 = vector.load %arg5[%c0_12, %c0_13] : memref<1x256xf32, #tpu.memory_space<vmem>>, vector<1x256xf32>
    %17 = vector.broadcast %16 : vector<1x256xf32> to vector<128x256xf32>
    %18 = arith.addf %15, %17 : vector<128x256xf32>
    %cst_14 = arith.constant 0.000000e+00 : f32
    %19 = vector.broadcast %cst_14 : f32 to vector<128x256xf32>
    %20 = arith.cmpf ogt, %18, %19 : vector<128x256xf32>
    %cst_15 = arith.constant 2.000000e-01 : f32
    %21 = vector.broadcast %cst_15 : f32 to vector<128x256xf32>
    %22 = arith.mulf %21, %18 : vector<128x256xf32>
    %23 = arith.select %20, %18, %22 : vector<128x256xi1>, vector<128x256xf32>
    %c0_16 = arith.constant 0 : index
    %c0_17 = arith.constant 0 : index
    %24 = vector.load %arg11[%c0_16, %c0_17] : memref<128x256xf32, #tpu.memory_space<vmem>>, vector<128x256xf32>
    tpu.vector_store %arg11[%c0_16, %c0_17], %23 {strides = array<i32>} : memref<128x256xf32, #tpu.memory_space<vmem>>, vector<128x256xf32>,
    %25 = arith.truncf %23 : vector<128x256xf32> to vector<128x256xbf16>
    %c0_18 = arith.constant 0 : index
    %c0_19 = arith.constant 0 : index
    %26 = vector.load %arg6[%c0_18, %c0_19] : memref<256x256xbf16, #tpu.memory_space<vmem>>, vector<256x256xbf16>
    %cst_20 = arith.constant dense<0.000000e+00> : vector<128x256xf32>
    %27 = tpu.matmul %25, %26, %cst_20 {dimension_numbers = #tpu.dot_dimension_numbers<[1], [0], [0], [1], [0, 0, 1, 1], [], []>} : vector<128x256xbf16>, vector<256x256xbf16>, vector<128x256xf32> -> vector<128x256xf32>
    %c0_21 = arith.constant 0 : index
    %c0_22 = arith.constant 0 : index
    %28 = vector.load %arg7[%c0_21, %c0_22] : memref<1x256xf32, #tpu.memory_space<vmem>>, vector<1x256xf32>
    %29 = vector.broadcast %28 : vector<1x256xf32> to vector<128x256xf32>
    %30 = arith.addf %27, %29 : vector<128x256xf32>
    %cst_23 = arith.constant 0.000000e+00 : f32
    %31 = vector.broadcast %cst_23 : f32 to vector<128x256xf32>
    %32 = arith.cmpf ogt, %30, %31 : vector<128x256xf32>
    %cst_24 = arith.constant 2.000000e-01 : f32
    %33 = vector.broadcast %cst_24 : f32 to vector<128x256xf32>
    %34 = arith.mulf %33, %30 : vector<128x256xf32>
    %35 = arith.select %32, %30, %34 : vector<128x256xi1>, vector<128x256xf32>
    %c0_25 = arith.constant 0 : index
    %c0_26 = arith.constant 0 : index
    %36 = vector.load %arg12[%c0_25, %c0_26] : memref<128x256xf32, #tpu.memory_space<vmem>>, vector<128x256xf32>
    tpu.vector_store %arg12[%c0_25, %c0_26], %35 {strides = array<i32>} : memref<128x256xf32, #tpu.memory_space<vmem>>, vector<128x256xf32>,
    %37 = arith.truncf %35 : vector<128x256xf32> to vector<128x256xbf16>
    %c0_27 = arith.constant 0 : index
    %c0_28 = arith.constant 0 : index
    %38 = vector.load %arg8[%c0_27, %c0_28] : memref<256x32xbf16, #tpu.memory_space<vmem>>, vector<256x32xbf16>
    %cst_29 = arith.constant dense<0.000000e+00> : vector<128x32xf32>
    %39 = tpu.matmul %37, %38, %cst_29 {dimension_numbers = #tpu.dot_dimension_numbers<[1], [0], [0], [1], [0, 0, 1, 1], [], []>} : vector<128x256xbf16>, vector<256x32xbf16>, vector<128x32xf32> -> vector<128x32xf32>
    %c0_30 = arith.constant 0 : index
    %c0_31 = arith.constant 0 : index
    %40 = vector.load %arg9[%c0_30, %c0_31] : memref<1x32xf32, #tpu.memory_space<vmem>>, vector<1x32xf32>
    %41 = vector.broadcast %40 : vector<1x32xf32> to vector<128x32xf32>
    %42 = arith.addf %39, %41 : vector<128x32xf32>
    %c0_32 = arith.constant 0 : index
    %c0_33 = arith.constant 0 : index
    %43 = vector.load %arg13[%c0_32, %c0_33] : memref<128x32xf32, #tpu.memory_space<vmem>>, vector<128x32xf32>
    tpu.vector_store %arg13[%c0_32, %c0_33], %42 {strides = array<i32>} : memref<128x32xf32, #tpu.memory_space<vmem>>, vector<128x32xf32>,
    return
  }
  func.func @transform_0(%arg0: i32) -> (i32, i32) {
    %c0_i32 = arith.constant 0 : i32
    %c0_i32_0 = arith.constant 0 : i32
    return %arg0, %c0_i32 : i32, i32
  }
  func.func @transform_1(%arg0: i32) -> (i32, i32) {
    %c0_i32 = arith.constant 0 : i32
    %c0_i32_0 = arith.constant 0 : i32
    %c0_i32_1 = arith.constant 0 : i32
    return %c0_i32, %c0_i32_0 : i32, i32
  }
  func.func @transform_2(%arg0: i32) -> (i32, i32) {
    %c0_i32 = arith.constant 0 : i32
    %c0_i32_0 = arith.constant 0 : i32
    %c0_i32_1 = arith.constant 0 : i32
    return %c0_i32, %c0_i32_0 : i32, i32
  }
  func.func @transform_3(%arg0: i32) -> (i32, i32) {
    %c0_i32 = arith.constant 0 : i32
    %c0_i32_0 = arith.constant 0 : i32
    %c0_i32_1 = arith.constant 0 : i32
    return %c0_i32, %c0_i32_0 : i32, i32
  }
  func.func @transform_4(%arg0: i32) -> (i32, i32) {
    %c0_i32 = arith.constant 0 : i32
    %c0_i32_0 = arith.constant 0 : i32
    %c0_i32_1 = arith.constant 0 : i32
    return %c0_i32, %c0_i32_0 : i32, i32
  }
  func.func @transform_5(%arg0: i32) -> (i32, i32) {
    %c0_i32 = arith.constant 0 : i32
    %c0_i32_0 = arith.constant 0 : i32
    %c0_i32_1 = arith.constant 0 : i32
    return %c0_i32, %c0_i32_0 : i32, i32
  }
  func.func @transform_6(%arg0: i32) -> (i32, i32) {
    %c0_i32 = arith.constant 0 : i32
    %c0_i32_0 = arith.constant 0 : i32
    %c0_i32_1 = arith.constant 0 : i32
    return %c0_i32, %c0_i32_0 : i32, i32
  }
  func.func @transform_7(%arg0: i32) -> (i32, i32) {
    %c0_i32 = arith.constant 0 : i32
    %c0_i32_0 = arith.constant 0 : i32
    %c0_i32_1 = arith.constant 0 : i32
    return %c0_i32, %c0_i32_0 : i32, i32
  }
  func.func @transform_8(%arg0: i32) -> (i32, i32) {
    %c0_i32 = arith.constant 0 : i32
    %c0_i32_0 = arith.constant 0 : i32
    %c0_i32_1 = arith.constant 0 : i32
    return %c0_i32, %c0_i32_0 : i32, i32
  }
  func.func @transform_9(%arg0: i32) -> (i32, i32) {
    %c0_i32 = arith.constant 0 : i32
    %c0_i32_0 = arith.constant 0 : i32
    return %arg0, %c0_i32 : i32, i32
  }
  func.func @transform_10(%arg0: i32) -> (i32, i32) {
    %c0_i32 = arith.constant 0 : i32
    %c0_i32_0 = arith.constant 0 : i32
    return %arg0, %c0_i32 : i32, i32
  }
  func.func @transform_11(%arg0: i32) -> (i32, i32) {
    %c0_i32 = arith.constant 0 : i32
    %c0_i32_0 = arith.constant 0 : i32
    return %arg0, %c0_i32 : i32, i32
  }
  func.func @transform_12(%arg0: i32) -> (i32, i32) {
    %c0_i32 = arith.constant 0 : i32
    %c0_i32_0 = arith.constant 0 : i32
    return %arg0, %c0_i32 : i32, i32
  }
}

</mosaic_0001>

<bundles_post_ra>
// kernel: encoder_forward.1
= control target key start
LH: loop header
LB: loop body
LE: loop exit
PB: predicated region body
PF: predicated region fallthrough
CT: control target
= control target key end

     0   :  { %s3661_s0 = inlined_call_operand.vmem [shape: f32[256,63], index: 0, kind: input, shape index: {}]   ;;  %s3662_s1 = inlined_call_operand.hbm [shape: bf16[63,256], index: 1, kind: input, shape index: {}]   ;;  %s3663_s2 = inlined_call_operand.vmem [shape: f32[1,256], index: 2, kind: input, shape index: {}]   ;;  %s3664_s3 = inlined_call_operand.vmem [shape: bf16[256,256], index: 3, kind: input, shape index: {}]   ;;  %s3665_s4 = inlined_call_operand.vmem [shape: f32[1,256], index: 4, kind: input, shape index: {}]   ;;  %s3666_s5 = inlined_call_operand.vmem [shape: bf16[256,256], index: 5, kind: input, shape index: {}]   ;;  %s3667_s6 = inlined_call_operand.vmem [shape: f32[1,256], index: 6, kind: input, shape index: {}]   ;;  %s3668_s7 = inlined_call_operand.vmem [shape: bf16[256,32], index: 7, kind: input, shape index: {}]   ;;  %s3669_s8 = inlined_call_operand.vmem [shape: f32[1,32], index: 8, kind: input, shape index: {}]   ;;  %s3670_s9 = inlined_call_operand.hbm [shape: f32[256,256], index: 9, kind: output, shape index: {0}]   ;;  %s3671_s10 = inlined_call_operand.hbm [shape: f32[256,256], index: 10, kind: output, shape index: {1}]   ;;  %s3672_s11 = inlined_call_operand.hbm [shape: f32[256,256], index: 11, kind: output, shape index: {2}]   ;;  %s3673_s12 = inlined_call_operand.vmem [shape: f32[256,32], index: 12, kind: output, shape index: {3}]  }
   0x1   :  { %3677 = sst [smem:[#allocation12_spill]] %s3661_s0 }
   0x2   :  { %3678 = sst [smem:[#allocation13_spill]] %s3662_s1 }
   0x3   :  { %3679 = sst [smem:[#allocation14_spill]] %s3663_s2 }
   0x4   :  { %3680 = sst [smem:[#allocation15_spill]] %s3664_s3 }
   0x5   :  { %3681 = sst [smem:[#allocation16_spill]] %s3665_s4 }
   0x6   :  { %3682 = sst [smem:[#allocation17_spill]] %s3666_s5 }
   0x7   :  { %3683 = sst [smem:[#allocation18_spill]] %s3667_s6 }
   0x8   :  { %3684 = sst [smem:[#allocation19_spill]] %s3668_s7 }
   0x9   :  { %18 = vsyncpa [#allocation3], 0 }
   0xa   :  { %19 = vsyncpa [#allocation4], 0 }
   0xb   :  { %21 = vsyncpa [#allocation4 + $0x1], 0 }
   0xc   :  { %22 = vsyncpa [#allocation7], 0 }
   0xd   :  { %24 = vsyncpa [#allocation7 + $0x1], 0  ;;  %s2860_s21 = smov 0   ;;  %s2862_s22 = smov 0  }
   0xe   :  { %s2864_s23 = smov 0   ;;  %s2866_s24 = smov 0  }
   0xf LB: > { %s2881_s25 = sadd.s32 4294967295, %s2783_s24   ;;  %s3674_s26 = sadd.s32 4294967294, %s2783_s24   ;;  %s2783_s24 = sphi %s2866_s24, %s3704_s24   ;;  %s2779_s23 = sphi %s2864_s23, %s3703_s23   ;;  %s2775_s22 = sphi %s2862_s22, %s3702_s22   ;;  %s2771_s21 = sphi %s2860_s21, %s3701_s21  }
  0x10   : > { %s2885_s27 = sadd.s32 1, %s2783_s24   ;;  %s231_s28 = sadd.s32 1, %s2779_s23 }
  0x11   : > { %s228_s29 = ssub.s32 %s2783_s24, %s2885_s27  ;;  %p241_p0 = scmp.ne.s32.totalorder %s2779_s23, %s2775_s22 }
  0x12   : > { %p229_p1 = scmp.eq.s32.totalorder %s228_s29, 0  ;;  %p242_p2 = scmp.eq.s32.totalorder %s2881_s25, 1 }
  0x13   : > { %p247_p3 = scmp.ne.s32.totalorder %s2775_s22, %s2771_s21  ;;  %p248_p4 = scmp.eq.s32.totalorder %s3674_s26, 1 }
  0x14   : > { %s2898_s30 = scalar_select %p229_p1, %s2779_s23, %s231_s28  }
  0x15   : > { %p2900_p5 = por %p242_p2, %p241_p0  ;;  %p2904_p6 = por %p248_p4, %p247_p3 }
  0x16   : > { %p2238_p7 = scmp.ge.s32.totalorder %s2783_s24, 1  ;;  %p333_p8 = scmp.lt.s32.totalorder %s2783_s24, 3 }
  0x17   : > { %s3686_s14 = scalar_select %p2904_p6, 1, 0 }
  0x18   : > { %p2471_p9 = scmp.eq.s32.totalorder %s2881_s25, 0  ;;  %p2911_p10 = pnand %p2238_p7, %p333_p8 }
  0x19   : > { %s2785_s16 = smov [#allocation2]  }
  0x1a   : > { %s345_s17 = sshll.u32 %s2785_s16, 4  ;;  %p2457_p11 = pneg %p2911_p10  ;;  %s346_s17 = int_to_ptr.vmem [resolvable:$true] %s345_s17 }
  0x1b   : > { %s2648_s18 = scalar_lea.vmem %s346_s17, 1024  ;;  %p2656_p3 = scmp.lt.s32.totalorder %s346_s17, %s346_s17 }
  0x1c   : > { %p2458_p12 = pnand %p2471_p9, %p2457_p11  ;;  %p2649_p0 = scmp.ne.s32.totalorder %s346_s17, %s2648_s18 }
  0x1d   : > { %p2657_p4 = scmp.lt.s32.totalorder %s2648_s18, %s2648_s18 }
  0x1e   : > { %p2639_p13 = pneg %p2458_p12 }
  0x1f   : > { %p2658_p6 = por %p2657_p4, %p2656_p3 }
  0x20   : > { %p2651_p1 = pnand %p2649_p0, %p2639_p13 }
  0x22   : > { %p2652_p2 = pneg %p2651_p1 }
  0x24   : > { %p2659_p7 = pnand %p2658_p6, %p2652_p2 }
  0x26   : > { %2662 = shalt.err (!%p2659_p7)
}
  0x27   : > { %s2786_s19 = smov 128   ;;  %s2787_s20 = smov 8  }
  0x28   : > { %s3688_s1 = sld [smem:[#allocation13_spill]] }
  0x2a   : > { %391 = sbr.rel (%p2911_p10) target bundleno = 951 (0x3b7), region = 56 }
  0x2e   : > { %2460 = dma.hbm_to_vmem [thread:$0]  (!%p2458_p12), %s3688_s1, 1024, %s346_s17, [#allocation3], %s2786_s19, %s2786_s19, %s2787_s20  }
  0x2f   : > { %2758 = dma.done.wait (%p2471_p9), [#allocation3], 1024  }
  0x30   : > { %2760 = vsyncadd (%p2471_p9), [#allocation3], 4294966272  ;;  %vm571_vm0 = vcmask 1046528   ;;  %v2788_v0 = vmov 0   ;;  %s2246_s16 = sshll.u32 %s2881_s25, 4  ;;  %vm572_vm1 = vcmask 1047552  }
  0x31   : > { %613 = vmatprep.mubr.bf16.mxu0 %v2788_v0  ;;  %v2789_v1 = vmov 65535   ;;  %p449_p6 = scmp.lt.s32.totalorder %s2246_s16, 31  ;;  %v2513_v4 = vld [vmem:[#allocation2 + $0x34] ss:$8 sps:$4 sm:$0xff]   ;;  %v2515_v5 = vld [vmem:[#allocation2 + $0x30] ss:$8 sps:$4 sm:$0xff]  }
  0x32   : > { %v573_v2 = vsel %vm571_vm0, 4294967295, %v2789_v1  ;;  %v2516_v7 = vld [vmem:[#allocation2 + $0x24] ss:$8 sps:$4 sm:$0xff]   ;;  %v2518_v9 = vld [vmem:[#allocation2 + $0x20] ss:$8 sps:$4 sm:$0xff]   ;;  %s3689_s0 = sld [smem:[#allocation12_spill]] }
  0x33   : > { %v574_v3 = vsel %vm572_vm1, %v573_v2, 0  ;;  %s3706_s16 = smov (!%p449_p6, %s2246_s16), 31  ;;  %v2519_v10 = vld [vmem:[#allocation2 + $0x14] ss:$8 sps:$4 sm:$0xff]   ;;  %v2521_v11 = vld [vmem:[#allocation2 + $0x10] ss:$8 sps:$4 sm:$0xff]  }
  0x34   : > { %v579_v6 = vand.u32 %v2513_v4, %v574_v3  ;;  %v576_v8 = vand.u32 %v2515_v5, %v574_v3  ;;  %s3675_s15 = sshll.u32 %s3706_s16, 3  ;;  %v2522_v12 = vld [vmem:[#allocation2 + $0x4] ss:$8 sps:$4 sm:$0xff]   ;;  %v2524_v13 = vld [vmem:[#allocation2] ss:$8 sps:$4 sm:$0xff]   ;;  %s3690_s3 = sld [smem:[#allocation15_spill]] }
  0x35   : > { %vm546_vm2 = vcmask 515072   ;;  %s3691_s5 = sld [smem:[#allocation17_spill]]  ;;  %s3482_s29 = sshll.u32 %s2881_s25, 12 }
  0x36   : > { %589 = vmatprep.subr.bf16.mxu0 %v579_v6  ;;  %s3692_s2 = sld [smem:[#allocation14_spill]]  ;;  %s3488_s20 = scalar_lea.hbm %s3671_s10, %s3482_s29 }
  0x37   : > { %590 = vmatpush1.bf16.msra.mxu0 %v576_v8  ;;  %s3693_s7 = sld [smem:[#allocation19_spill]] }
  0x38   : > { %591 = vmatprep.subr.bf16.mxu0 %v2516_v7  ;;  %s2938_s19 = scalar_lea.vmem %s3689_s0, %s3675_s15  ;;  %s3676_s0 = sand.u32 1, %s2775_s22  }
  0x39   : > { %v464_v14 = vld [vmem:[%s2938_s19] sm:$0xff]  ;;  %v465_v18 = vld [vmem:[%s2938_s19 + $0x8] sm:$0xff]  ;;  %v466_v24 = vld [vmem:[%s2938_s19 + $0x10] sm:$0xff]  ;;  %s3161_s28 = sshll.u32 %s3676_s0, 8  ;;  %s3694_s4 = sld [smem:[#allocation16_spill]] }
  0x3a   : > { %v2525_v15 = vld [vmem:[%s3690_s3 + $0x74] ss:$8 sps:$4 sm:$0xff]   ;;  %v2527_v16 = vld [vmem:[%s3690_s3 + $0x70] ss:$8 sps:$4 sm:$0xff]   ;;  %v2528_v17 = vld [vmem:[%s3690_s3 + $0x64] ss:$8 sps:$4 sm:$0xff]   ;;  %v480_v21 = vpack.c.bf16 %v465_v18, %v464_v14 }
  0x3b   : > { %592 = vmatpush1.bf16.msra.mxu0 %v2518_v9  ;;  %1042 = vmatprep.subr.bf16.mxu1 %v2525_v15  ;;  %v2530_v19 = vld [vmem:[%s3690_s3 + $0x60] ss:$8 sps:$4 sm:$0xff]   ;;  %v2531_v20 = vld [vmem:[%s3690_s3 + $0x54] ss:$8 sps:$4 sm:$0xff]   ;;  %v2533_v22 = vld [vmem:[%s3690_s3 + $0x50] ss:$8 sps:$4 sm:$0xff]  }
  0x3c   : > { %593 = vmatprep.subr.bf16.mxu0 %v2519_v10  ;;  %1043 = vmatpush1.bf16.msra.mxu1 %v2527_v16  ;;  %v2534_v23 = vld [vmem:[%s3690_s3 + $0x44] ss:$8 sps:$4 sm:$0xff]   ;;  %v467_v25 = vld [vmem:[%s2938_s19 + $0x18] sm:$0xff]  ;;  %v2536_v26 = vld [vmem:[%s3690_s3 + $0x40] ss:$8 sps:$4 sm:$0xff]   ;;  %s3167_s1 = scalar_lea.vmem [#allocation5], %s3161_s28 }
  0x3d   : > { %1044 = vmatprep.subr.bf16.mxu1 %v2528_v17  ;;  %v2537_v27 = vld [vmem:[%s3690_s3 + $0x34] ss:$8 sps:$4 sm:$0xff]   ;;  %v481_v28 = vpack.c.bf16 %v467_v25, %v466_v24  ;;  %v2539_v29 = vld [vmem:[%s3690_s3 + $0x30] ss:$8 sps:$4 sm:$0xff]   ;;  %v468_v30 = vld [vmem:[%s2938_s19 + $0x20] sm:$0xff]  ;;  %s3312_s17 = scalar_lea.vmem [#allocation6], %s3161_s28 }
  0x3e   : > { %v469_v31 = vld [vmem:[%s2938_s19 + $0x28] sm:$0xff]  ;;  %v2543_v34 = vld [vmem:[%s3690_s3 + $0x14] ss:$8 sps:$4 sm:$0xff]   ;;  %v2545_v36 = vld [vmem:[%s3690_s3 + $0x10] ss:$8 sps:$4 sm:$0xff]   ;;  %s3695_s6 = sld [smem:[#allocation18_spill]] }
  0x3f   : > { %594 = vmatpush1.bf16.msra.mxu0 %v2521_v11  ;;  %v2540_v32 = vld [vmem:[%s3690_s3 + $0x24] ss:$8 sps:$4 sm:$0xff]   ;;  %v2542_v33 = vld [vmem:[%s3690_s3 + $0x20] ss:$8 sps:$4 sm:$0xff]   ;;  %v482_v35 = vpack.c.bf16 %v469_v31, %v468_v30  ;;  %v470_v38 = vld [vmem:[%s2938_s19 + $0x30] sm:$0xff]  ;;  %s3417_s26 = scalar_lea.vmem [#allocation8], %s3161_s28 }
  0x40   : > { %595 = vmatprep.subr.bf16.mxu0 %v2522_v12  ;;  %1045 = vmatpush1.bf16.msra.mxu1 %v2530_v19  ;;  %v2546_v37 = vld [vmem:[%s3690_s3 + $0x4] ss:$8 sps:$4 sm:$0xff]   ;;  %v471_v39 = vld [vmem:[%s2938_s19 + $0x38] sm:$0xff]  ;;  %v2548_v40 = vld [vmem:[%s3690_s3] ss:$8 sps:$4 sm:$0xff]   ;;  %s2014_s28 = sand.u32 1, %s2881_s25  }
  0x41   : > { %1046 = vmatprep.subr.bf16.mxu1 %v2531_v20  ;;  %v2549_v41 = vld [vmem:[%s3690_s3 + $0xf4] ss:$8 sps:$4 sm:$0xff]   ;;  %v483_v42 = vpack.c.bf16 %v471_v39, %v470_v38  ;;  %v2551_v43 = vld [vmem:[%s3690_s3 + $0xf0] ss:$8 sps:$4 sm:$0xff]   ;;  %v2552_v44 = vld [vmem:[%s3690_s3 + $0xe4] ss:$8 sps:$4 sm:$0xff]  }
  0x42   : > { %v472_v45 = vld [vmem:[%s2938_s19 + $0x40] sm:$0xff]  ;;  %v473_v46 = vld [vmem:[%s2938_s19 + $0x48] sm:$0xff]  ;;  %v2555_v48 = vld [vmem:[%s3690_s3 + $0xd4] ss:$8 sps:$4 sm:$0xff]   ;;  %s2056_s0 = sshll.u32 %s3312_s17, 4  ;;  %s3499_s25 = scalar_lea.sflag [#allocation7], %s2014_s28  ;;  %s3497_s0 = int_to_ptr.vmem [resolvable:$true] %s2056_s0 }
  0x43   : > { %596 = vmatpush1.bf16.msra.mxu0 %v2524_v13  ;;  %v2554_v47 = vld [vmem:[%s3690_s3 + $0xe0] ss:$8 sps:$4 sm:$0xff]   ;;  %v484_v49 = vpack.c.bf16 %v473_v46, %v472_v45  ;;  %v2557_v50 = vld [vmem:[%s3690_s3 + $0xd0] ss:$8 sps:$4 sm:$0xff]   ;;  %v2558_v51 = vld [vmem:[%s3690_s3 + $0xc4] ss:$8 sps:$4 sm:$0xff]  }
  0x44   : > { %1047 = vmatpush1.bf16.msra.mxu1 %v2533_v22  ;;  %v474_v52 = vld [vmem:[%s2938_s19 + $0x50] sm:$0xff]  ;;  %v475_v53 = vld [vmem:[%s2938_s19 + $0x58] sm:$0xff]  ;;  %v2560_v54 = vld [vmem:[%s3690_s3 + $0xc0] ss:$8 sps:$4 sm:$0xff]   ;;  %s2790_s15 = smov [#allocation6]  }
  0x45   : > { %1048 = vmatprep.subr.bf16.mxu1 %v2534_v23  ;;  %v2561_v55 = vld [vmem:[%s3690_s3 + $0xb4] ss:$8 sps:$4 sm:$0xff]   ;;  %v485_v56 = vpack.c.bf16 %v475_v53, %v474_v52  ;;  %v476_v57 = vld [vmem:[%s2938_s19 + $0x60] sm:$0xff]  ;;  %v477_v58 = vld [vmem:[%s2938_s19 + $0x68] sm:$0xff]  ;;  %s2667_s18 = sshll.u32 %s2790_s15, 4  ;;  %s2668_s18 = int_to_ptr.vmem [resolvable:$false] %s2667_s18 }
  0x46   : > { %2258 = vmatmul.mubr.msk.bf16.vlgmr.msra.gmra.mxu0 %vm546_vm2, %v480_v21  ;;  %v486_v59 = vpack.c.bf16 %v477_v58, %v476_v57  ;;  %v478_v60 = vld [vmem:[%s2938_s19 + $0x70] sm:$0xff]  ;;  %v479_v61 = vld [vmem:[%s2938_s19 + $0x78] sm:$0xff]  ;;  %v2564_v1 = vld [vmem:[%s3690_s3 + $0xa4] ss:$8 sps:$4 sm:$0xff]   ;;  %p2670_p11 = scmp.lt.s32.totalorder %s3497_s0, %s2668_s18 }
  0x47   : > { %623 = vmatprep.mubr.bf16.mxu0 %v2788_v0  ;;  %v487_v62 = vpack.c.bf16 %v479_v61, %v478_v60  ;;  %v2563_v63 = vld [vmem:[%s3690_s3 + $0xb0] ss:$8 sps:$4 sm:$0xff]   ;;  %v2566_v2 = vld [vmem:[%s3690_s3 + $0xa0] ss:$8 sps:$4 sm:$0xff]   ;;  %v2570_v4 = vld [vmem:[%s3690_s3 + $0x84] ss:$8 sps:$4 sm:$0xff]  }
  0x48   : > { %1049 = vmatpush1.bf16.msra.mxu1 %v2536_v26  ;;  %v2569_v3 = vld [vmem:[%s3690_s3 + $0x90] ss:$8 sps:$4 sm:$0xff]   ;;  %v2572_v5 = vld [vmem:[%s3690_s3 + $0x80] ss:$8 sps:$4 sm:$0xff]   ;;  %v2575_v7 = vld [vmem:[%s3691_s5 + $0x74] ss:$8 sps:$4 sm:$0xff]  }
  0x49   : > { %1050 = vmatprep.subr.bf16.mxu1 %v2537_v27  ;;  %v2573_v6 = vld [vmem:[%s3691_s5 + $0x70] ss:$8 sps:$4 sm:$0xff]   ;;  %v2578_v8 = vld [vmem:[%s3691_s5 + $0x64] ss:$8 sps:$4 sm:$0xff]   ;;  %1503 = vmatprep.subr.bf16.mxu0 %v2575_v7  ;;  %v2576_v9 = vld [vmem:[%s3691_s5 + $0x60] ss:$8 sps:$4 sm:$0xff]  }
  0x4a   : > { %1504 = vmatpush1.bf16.msra.mxu0 %v2573_v6  ;;  %v2581_v10 = vld [vmem:[%s3691_s5 + $0x54] ss:$8 sps:$4 sm:$0xff]   ;;  %v2579_v11 = vld [vmem:[%s3691_s5 + $0x50] ss:$8 sps:$4 sm:$0xff]   ;;  %v2584_v12 = vld [vmem:[%s3691_s5 + $0x44] ss:$8 sps:$4 sm:$0xff]  }
  0x4b   : > { %1505 = vmatprep.subr.bf16.mxu0 %v2578_v8  ;;  %v2582_v13 = vld [vmem:[%s3691_s5 + $0x40] ss:$8 sps:$4 sm:$0xff]   ;;  %v2587_v14 = vld [vmem:[%s3691_s5 + $0x34] ss:$8 sps:$4 sm:$0xff]   ;;  %v2585_v15 = vld [vmem:[%s3691_s5 + $0x30] ss:$8 sps:$4 sm:$0xff]  }
  0x4c   : > { %1051 = vmatpush1.bf16.msra.mxu1 %v2539_v29  ;;  %v2590_v16 = vld [vmem:[%s3691_s5 + $0x24] ss:$8 sps:$4 sm:$0xff]   ;;  %v2588_v17 = vld [vmem:[%s3691_s5 + $0x20] ss:$8 sps:$4 sm:$0xff]   ;;  %v2593_v18 = vld [vmem:[%s3691_s5 + $0x14] ss:$8 sps:$4 sm:$0xff]   ;;  %v498_v29 = vlaneseq }
  0x4d   : > { %1052 = vmatprep.subr.bf16.mxu1 %v2540_v32  ;;  %v2591_v19 = vld [vmem:[%s3691_s5 + $0x10] ss:$8 sps:$4 sm:$0xff]   ;;  %v2596_v20 = vld [vmem:[%s3691_s5 + $0x4] ss:$8 sps:$4 sm:$0xff]   ;;  %v2594_v21 = vld [vmem:[%s3691_s5] ss:$8 sps:$4 sm:$0xff]  }
  0x4e   : > { %2259 = vmatmul.mubr.msk.bf16.gmra.mxu0 %vm546_vm2, %v481_v28  ;;  %v2599_v22 = vld [vmem:[%s3691_s5 + $0xf4] ss:$8 sps:$4 sm:$0xff]   ;;  %v2597_v23 = vld [vmem:[%s3691_s5 + $0xf0] ss:$8 sps:$4 sm:$0xff]   ;;  %v2602_v24 = vld [vmem:[%s3691_s5 + $0xe4] ss:$8 sps:$4 sm:$0xff]  }
  0x4f   : > { %633 = vmatprep.mubr.bf16.mxu0 %v2788_v0  ;;  %1506 = vmatpush1.bf16.msra.mxu0 %v2576_v9  ;;  %v2600_v25 = vld [vmem:[%s3691_s5 + $0xe0] ss:$8 sps:$4 sm:$0xff]   ;;  %v2605_v26 = vld [vmem:[%s3691_s5 + $0xd4] ss:$8 sps:$4 sm:$0xff]   ;;  %v2603_v27 = vld [vmem:[%s3691_s5 + $0xd0] ss:$8 sps:$4 sm:$0xff]  }
  0x50   : > { %1053 = vmatpush1.bf16.msra.mxu1 %v2542_v33  ;;  %1507 = vmatprep.subr.bf16.mxu0 %v2581_v10  ;;  %v2608_v28 = vld [vmem:[%s3691_s5 + $0xc4] ss:$8 sps:$4 sm:$0xff]   ;;  %v2606_v30 = vld [vmem:[%s3691_s5 + $0xc0] ss:$8 sps:$4 sm:$0xff]   ;;  %v2611_v31 = vld [vmem:[%s3691_s5 + $0xb4] ss:$8 sps:$4 sm:$0xff]  }
  0x51   : > { %1054 = vmatprep.subr.bf16.mxu1 %v2543_v34  ;;  %v499_v32 = vshrl.u32 %v498_v29, 7  ;;  %v2609_v33 = vld [vmem:[%s3691_s5 + $0xb0] ss:$8 sps:$4 sm:$0xff]  }
  0x53   : > { %1508 = vmatpush1.bf16.msra.mxu0 %v2579_v11  ;;  %v3145_v34 = vsub.s32 0, %v499_v32 }
  0x54   : > { %1055 = vmatpush1.bf16.msra.mxu1 %v2545_v36  ;;  %1509 = vmatprep.subr.bf16.mxu0 %v2584_v12  ;;  %v3150_v36 = vsub.s32 1, %v499_v32 }
  0x55   : > { %1056 = vmatprep.subr.bf16.mxu1 %v2546_v37 }
  0x56   : > { %2260 = vmatmul.mubr.msk.bf16.gmra.mxu0 %vm546_vm2, %v482_v35  ;;  %v496_v35 = vld [vmem:[%s3692_s2] sm:$0x3] }
  0x57   : > { %643 = vmatprep.mubr.bf16.mxu0 %v2788_v0  ;;  %1510 = vmatpush1.bf16.msra.mxu0 %v2582_v13  ;;  %v3153_v37 = vrot.slane %v496_v35, %v3145_v34  ;;  %v3157_v38 = vrot.slane %v496_v35, %v3150_v36 }
  0x58   : > { %1057 = vmatpush1.bf16.msra.mxu1 %v2548_v40  ;;  %1511 = vmatprep.subr.bf16.mxu0 %v2587_v14 }
  0x59   : > { %1058 = vmatprep.subr.bf16.mxu1 %v2549_v41 }
  0x5b   : > { %1512 = vmatpush1.bf16.msra.mxu0 %v2585_v15 }
  0x5c   : > { %1059 = vmatpush2.bf16.msra.mxu1 %v2551_v43  ;;  %1513 = vmatprep.subr.bf16.mxu0 %v2590_v16 }
  0x5d   : > { %1060 = vmatprep.subr.bf16.mxu1 %v2552_v44 }
  0x5e   : > { %2261 = vmatmul.mubr.msk.bf16.gmra.mxu0 %vm546_vm2, %v483_v42 }
  0x5f   : > { %653 = vmatprep.mubr.bf16.mxu0 %v2788_v0  ;;  %1514 = vmatpush1.bf16.msra.mxu0 %v2588_v17 }
  0x60   : > { %1061 = vmatpush2.bf16.msra.mxu1 %v2554_v47  ;;  %1515 = vmatprep.subr.bf16.mxu0 %v2593_v18 }
  0x61   : > { %1062 = vmatprep.subr.bf16.mxu1 %v2555_v48 }
  0x63   : > { %1516 = vmatpush1.bf16.msra.mxu0 %v2591_v19 }
  0x64   : > { %1063 = vmatpush2.bf16.msra.mxu1 %v2557_v50  ;;  %1517 = vmatprep.subr.bf16.mxu0 %v2596_v20 }
  0x65   : > { %1064 = vmatprep.subr.bf16.mxu1 %v2558_v51 }
  0x66   : > { %2262 = vmatmul.mubr.msk.bf16.gmra.mxu0 %vm546_vm2, %v484_v49 }
  0x67   : > { %663 = vmatprep.mubr.bf16.mxu0 %v2788_v0  ;;  %1518 = vmatpush1.bf16.msra.mxu0 %v2594_v21 }
  0x68   : > { %1065 = vmatpush2.bf16.msra.mxu1 %v2560_v54  ;;  %1519 = vmatprep.subr.bf16.mxu0 %v2599_v22 }
  0x69   : > { %1066 = vmatprep.subr.bf16.mxu1 %v2561_v55 }
  0x6b   : > { %1520 = vmatpush2.bf16.msra.mxu0 %v2597_v23 }
  0x6c   : > { %1067 = vmatpush2.bf16.msra.mxu1 %v2563_v63  ;;  %1521 = vmatprep.subr.bf16.mxu0 %v2602_v24 }
  0x6d   : > { %1068 = vmatprep.subr.bf16.mxu1 %v2564_v1 }
  0x6e   : > { %2263 = vmatmul.mubr.msk.bf16.gmra.mxu0 %vm546_vm2, %v485_v56 }
  0x6f   : > { %673 = vmatprep.mubr.bf16.mxu0 %v2788_v0  ;;  %1522 = vmatpush2.bf16.msra.mxu0 %v2600_v25 }
  0x70   : > { %1069 = vmatpush2.bf16.msra.mxu1 %v2566_v2  ;;  %1523 = vmatprep.subr.bf16.mxu0 %v2605_v26 }
  0x73   : > { %1524 = vmatpush2.bf16.msra.mxu0 %v2603_v27 }
  0x74   : > { %1525 = vmatprep.subr.bf16.mxu0 %v2608_v28 }
  0x76   : > { %2264 = vmatmul.mubr.msk.bf16.gmra.mxu0 %vm546_vm2, %v486_v59 }
  0x77   : > { %683 = vmatprep.mubr.bf16.mxu0 %v2788_v0  ;;  %v2567_v0 = vld [vmem:[%s3690_s3 + $0x94] ss:$8 sps:$4 sm:$0xff]   ;;  %1526 = vmatpush2.bf16.msra.mxu0 %v2606_v30  ;;  %s3495_s3 = scalar_lea.hbm %s3672_s11, %s3482_s29 }
  0x78   : > { %1070 = vmatprep.subr.bf16.mxu1 %v2567_v0  ;;  %1527 = vmatprep.subr.bf16.mxu0 %v2611_v31 }
  0x79   : > { %1071 = vmatpush2.bf16.msra.mxu1 %v2569_v3 }
  0x7a   : > { %1072 = vmatprep.subr.bf16.mxu1 %v2570_v4 }
  0x7b   : > { %1528 = vmatpush2.bf16.msra.mxu0 %v2609_v33 }
  0x7d   : > { %1073 = vmatpush2.bf16.msra.mxu1 %v2572_v5 }
  0x7e   : > { %2265 = vmatmul.mubr.msk.bf16.gmra.mxu0 %vm546_vm2, %v487_v62 }
 0x106   : > { %v615_v39 = vpop.f32.mrf.mxu0 }
 0x107   : > { %v616_v40 = vadd.f32 %v615_v39, %v3153_v37 }
 0x108   : > { %v617_v41 = vpop.f32.mrf.mxu0 }
 0x109   : > { %vm694_vm3 = vcmp.gt.f32.partialorder %v616_v40, 0.0  ;;  %v726_v42 = vmul.f32 0.2, %v616_v40  ;;  %v618_v43 = vadd.f32 %v617_v41, %v3157_v38 }
 0x10a   : > { %v619_v44 = vpop.f32.mrf.mxu0 }
 0x10b   : > { %v727_v45 = vmul.f32 0.2, %v618_v43  ;;  %v620_v46 = vadd.f32 %v619_v44, %v3153_v37  ;;  %vm695_vm4 = vcmp.gt.f32.partialorder %v618_v43, 0.0  ;;  %v758_v47 = vsel %vm694_vm3, %v616_v40, %v726_v42 }
 0x10c   : > { %v621_v48 = vpop.f32.mrf.mxu0  ;;  %790 = vst [vmem:[%s3167_s1] sm:$0xff] %v758_v47 }
 0x10d   : > { %vm696_vm5 = vcmp.gt.f32.partialorder %v620_v46, 0.0  ;;  %v728_v49 = vmul.f32 0.2, %v620_v46  ;;  %v622_v50 = vadd.f32 %v621_v48, %v3157_v38  ;;  %v759_v51 = vsel %vm695_vm4, %v618_v43, %v727_v45 }
 0x10e   : > { %v625_v52 = vpop.f32.mrf.mxu0  ;;  %791 = vst [vmem:[%s3167_s1 + $0x8] sm:$0xff] %v759_v51 }
 0x10f   : > { %v729_v53 = vmul.f32 0.2, %v622_v50  ;;  %v626_v54 = vadd.f32 %v625_v52, %v3153_v37  ;;  %vm697_vm6 = vcmp.gt.f32.partialorder %v622_v50, 0.0  ;;  %v760_v55 = vsel %vm696_vm5, %v620_v46, %v728_v49 }
 0x110   : > { %v627_v56 = vpop.f32.mrf.mxu0  ;;  %792 = vst [vmem:[%s3167_s1 + $0x10] sm:$0xff] %v760_v55  ;;  %v822_v62 = vpack.c.bf16 %v760_v55, %v758_v47 }
 0x111   : > { %vm698_vm7 = vcmp.gt.f32.partialorder %v626_v54, 0.0  ;;  %v730_v57 = vmul.f32 0.2, %v626_v54  ;;  %v628_v58 = vadd.f32 %v627_v56, %v3157_v38  ;;  %v761_v59 = vsel %vm697_vm6, %v622_v50, %v729_v53 }
 0x112   : > { %v629_v60 = vpop.f32.mrf.mxu0  ;;  %793 = vst [vmem:[%s3167_s1 + $0x18] sm:$0xff] %v761_v59  ;;  %v823_v61 = vpack.c.bf16 %v761_v59, %v759_v51 }
 0x113   : > { %vm699_vm8 = vcmp.gt.f32.partialorder %v628_v58, 0.0  ;;  %v731_v63 = vmul.f32 0.2, %v628_v58  ;;  %v630_v1 = vadd.f32 %v629_v60, %v3153_v37  ;;  %v762_v2 = vsel %vm698_vm7, %v626_v54, %v730_v57 }
 0x114   : > { %v631_v0 = vpop.f32.mrf.mxu0  ;;  %1074 = vmatprep.mubr.bf16.mxu1 %v823_v61  ;;  %794 = vst [vmem:[%s3167_s1 + $0x20] sm:$0xff] %v762_v2 }
 0x115   : > { %vm700_vm9 = vcmp.gt.f32.partialorder %v630_v1, 0.0  ;;  %v732_v3 = vmul.f32 0.2, %v630_v1  ;;  %v632_v4 = vadd.f32 %v631_v0, %v3157_v38  ;;  %1075 = vmatmul.mubr.bf16.vlgmr.msra.gmra.mxu1 %v822_v62  ;;  %v763_v5 = vsel %vm699_vm8, %v628_v58, %v731_v63 }
 0x116   : > { %v635_v6 = vpop.f32.mrf.mxu0  ;;  %795 = vst [vmem:[%s3167_s1 + $0x28] sm:$0xff] %v763_v5 }
 0x117   : > { %vm701_vm10 = vcmp.gt.f32.partialorder %v632_v4, 0.0  ;;  %v733_v7 = vmul.f32 0.2, %v632_v4  ;;  %v636_v8 = vadd.f32 %v635_v6, %v3153_v37  ;;  %v764_v9 = vsel %vm700_vm9, %v630_v1, %v732_v3 }
 0x118   : > { %v637_v10 = vpop.f32.mrf.mxu0  ;;  %796 = vst [vmem:[%s3167_s1 + $0x30] sm:$0xff] %v764_v9  ;;  %v824_v16 = vpack.c.bf16 %v764_v9, %v762_v2 }
 0x119   : > { %vm702_vm11 = vcmp.gt.f32.partialorder %v636_v8, 0.0  ;;  %v734_v11 = vmul.f32 0.2, %v636_v8  ;;  %v638_v12 = vadd.f32 %v637_v10, %v3157_v38  ;;  %v765_v13 = vsel %vm701_vm10, %v632_v4, %v733_v7 }
 0x11a   : > { %v639_v14 = vpop.f32.mrf.mxu0  ;;  %797 = vst [vmem:[%s3167_s1 + $0x38] sm:$0xff] %v765_v13  ;;  %v825_v15 = vpack.c.bf16 %v765_v13, %v763_v5 }
 0x11b   : > { %vm703_vm12 = vcmp.gt.f32.partialorder %v638_v12, 0.0  ;;  %v735_v17 = vmul.f32 0.2, %v638_v12  ;;  %v640_v18 = vadd.f32 %v639_v14, %v3153_v37  ;;  %v766_v19 = vsel %vm702_vm11, %v636_v8, %v734_v11 }
 0x11c   : > { %v641_v20 = vpop.f32.mrf.mxu0  ;;  %1084 = vmatprep.mubr.bf16.mxu1 %v825_v15  ;;  %798 = vst [vmem:[%s3167_s1 + $0x40] sm:$0xff] %v766_v19 }
 0x11d   : > { %vm704_vm13 = vcmp.gt.f32.partialorder %v640_v18, 0.0  ;;  %v736_v21 = vmul.f32 0.2, %v640_v18  ;;  %v642_v22 = vadd.f32 %v641_v20, %v3157_v38  ;;  %1085 = vmatmul.mubr.bf16.gmra.mxu1 %v824_v16  ;;  %v767_v23 = vsel %vm703_vm12, %v638_v12, %v735_v17 }
 0x11e   : > { %v645_v24 = vpop.f32.mrf.mxu0  ;;  %799 = vst [vmem:[%s3167_s1 + $0x48] sm:$0xff] %v767_v23 }
 0x11f   : > { %vm705_vm14 = vcmp.gt.f32.partialorder %v642_v22, 0.0  ;;  %v737_v25 = vmul.f32 0.2, %v642_v22  ;;  %v646_v26 = vadd.f32 %v645_v24, %v3153_v37  ;;  %v768_v27 = vsel %vm704_vm13, %v640_v18, %v736_v21 }
 0x120   : > { %v647_v28 = vpop.f32.mrf.mxu0  ;;  %800 = vst [vmem:[%s3167_s1 + $0x50] sm:$0xff] %v768_v27  ;;  %v826_v35 = vpack.c.bf16 %v768_v27, %v766_v19 }
 0x121   : > { %vm706_vm15 = vcmp.gt.f32.partialorder %v646_v26, 0.0  ;;  %v738_v29 = vmul.f32 0.2, %v646_v26  ;;  %v648_v30 = vadd.f32 %v647_v28, %v3157_v38  ;;  %v769_v31 = vsel %vm705_vm14, %v642_v22, %v737_v25 }
 0x122   : > { %v649_v32 = vpop.f32.mrf.mxu0  ;;  %801 = vst [vmem:[%s3167_s1 + $0x58] sm:$0xff] %v769_v31  ;;  %v827_v33 = vpack.c.bf16 %v769_v31, %v767_v23 }
 0x123   : > { %vm707_vm0 = vcmp.gt.f32.partialorder %v648_v30, 0.0  ;;  %v739_v39 = vmul.f32 0.2, %v648_v30  ;;  %v650_v40 = vadd.f32 %v649_v32, %v3153_v37  ;;  %v770_v41 = vsel %vm706_vm15, %v646_v26, %v738_v29 }
 0x124   : > { %v651_v42 = vpop.f32.mrf.mxu0  ;;  %1094 = vmatprep.mubr.bf16.mxu1 %v827_v33  ;;  %802 = vst [vmem:[%s3167_s1 + $0x60] sm:$0xff] %v770_v41 }
 0x125   : > { %vm708_vm1 = vcmp.gt.f32.partialorder %v650_v40, 0.0  ;;  %v740_v43 = vmul.f32 0.2, %v650_v40  ;;  %v652_v44 = vadd.f32 %v651_v42, %v3157_v38  ;;  %1095 = vmatmul.mubr.bf16.gmra.mxu1 %v826_v35  ;;  %v771_v45 = vsel %vm707_vm0, %v648_v30, %v739_v39 }
 0x126   : > { %v655_v46 = vpop.f32.mrf.mxu0  ;;  %803 = vst [vmem:[%s3167_s1 + $0x68] sm:$0xff] %v771_v45 }
 0x127   : > { %vm709_vm2 = vcmp.gt.f32.partialorder %v652_v44, 0.0  ;;  %v741_v47 = vmul.f32 0.2, %v652_v44  ;;  %v656_v48 = vadd.f32 %v655_v46, %v3153_v37  ;;  %v772_v49 = vsel %vm708_vm1, %v650_v40, %v740_v43 }
 0x128   : > { %v657_v50 = vpop.f32.mrf.mxu0  ;;  %804 = vst [vmem:[%s3167_s1 + $0x70] sm:$0xff] %v772_v49  ;;  %v828_v56 = vpack.c.bf16 %v772_v49, %v770_v41 }
 0x129   : > { %vm710_vm3 = vcmp.gt.f32.partialorder %v656_v48, 0.0  ;;  %v742_v51 = vmul.f32 0.2, %v656_v48  ;;  %v658_v52 = vadd.f32 %v657_v50, %v3157_v38  ;;  %v773_v53 = vsel %vm709_vm2, %v652_v44, %v741_v47 }
 0x12a   : > { %v659_v54 = vpop.f32.mrf.mxu0  ;;  %805 = vst [vmem:[%s3167_s1 + $0x78] sm:$0xff] %v773_v53  ;;  %v829_v55 = vpack.c.bf16 %v773_v53, %v771_v45 }
 0x12b   : > { %vm711_vm4 = vcmp.gt.f32.partialorder %v658_v52, 0.0  ;;  %v743_v57 = vmul.f32 0.2, %v658_v52  ;;  %v660_v58 = vadd.f32 %v659_v54, %v3153_v37  ;;  %v774_v59 = vsel %vm710_vm3, %v656_v48, %v742_v51 }
 0x12c   : > { %v661_v60 = vpop.f32.mrf.mxu0  ;;  %1104 = vmatprep.mubr.bf16.mxu1 %v829_v55  ;;  %806 = vst [vmem:[%s3167_s1 + $0x80] sm:$0xff] %v774_v59 }
 0x12d   : > { %vm712_vm5 = vcmp.gt.f32.partialorder %v660_v58, 0.0  ;;  %v744_v61 = vmul.f32 0.2, %v660_v58  ;;  %v662_v62 = vadd.f32 %v661_v60, %v3157_v38  ;;  %1105 = vmatmul.mubr.bf16.gmra.mxu1 %v828_v56  ;;  %v775_v63 = vsel %vm711_vm4, %v658_v52, %v743_v57 }
 0x12e   : > { %v665_v1 = vpop.f32.mrf.mxu0  ;;  %807 = vst [vmem:[%s3167_s1 + $0x88] sm:$0xff] %v775_v63 }
 0x12f   : > { %vm713_vm6 = vcmp.gt.f32.partialorder %v662_v62, 0.0  ;;  %v745_v2 = vmul.f32 0.2, %v662_v62  ;;  %v666_v0 = vadd.f32 %v665_v1, %v3153_v37  ;;  %v776_v3 = vsel %vm712_vm5, %v660_v58, %v744_v61  ;;  %v2615_v1 = vld [vmem:[%s3691_s5 + $0x90] ss:$8 sps:$4 sm:$0xff]  }
 0x130   : > { %v667_v4 = vpop.f32.mrf.mxu0  ;;  %808 = vst [vmem:[%s3167_s1 + $0x90] sm:$0xff] %v776_v3  ;;  %v830_v10 = vpack.c.bf16 %v776_v3, %v774_v59  ;;  %v2621_v3 = vld [vmem:[%s3693_s7 + $0x78] sm:$0xff]  }
 0x131   : > { %vm714_vm7 = vcmp.gt.f32.partialorder %v666_v0, 0.0  ;;  %v746_v5 = vmul.f32 0.2, %v666_v0  ;;  %v668_v6 = vadd.f32 %v667_v4, %v3157_v38  ;;  %v777_v7 = vsel %vm713_vm6, %v662_v62, %v745_v2  ;;  %v2614_v62 = vld [vmem:[%s3691_s5 + $0xa4] ss:$8 sps:$4 sm:$0xff]   ;;  %v3254_v4 = vld [vmem:[%s3693_s7 + $0x38] sm:$0xff]   ;;  %2431 = vmatprep.subr.bf16.mxu1 %v2621_v3 }
 0x132   : > { %v669_v8 = vpop.f32.mrf.mxu0  ;;  %809 = vst [vmem:[%s3167_s1 + $0x98] sm:$0xff] %v777_v7  ;;  %v831_v9 = vpack.c.bf16 %v777_v7, %v775_v63  ;;  %1529 = vmatprep.subr.bf16.mxu0 %v2614_v62  ;;  %v2617_v63 = vld [vmem:[%s3691_s5 + $0x94] ss:$8 sps:$4 sm:$0xff]   ;;  %v2620_v2 = vld [vmem:[%s3691_s5 + $0x84] ss:$8 sps:$4 sm:$0xff]   ;;  %2439 = vmatpush3.bf16.msra.mxu1 %v3254_v4 }
 0x133   : > { %vm715_vm8 = vcmp.gt.f32.partialorder %v668_v6, 0.0  ;;  %v747_v11 = vmul.f32 0.2, %v668_v6  ;;  %v670_v12 = vadd.f32 %v669_v8, %v3153_v37  ;;  %v778_v13 = vsel %vm714_vm7, %v666_v0, %v746_v5  ;;  %v2618_v0 = vld [vmem:[%s3691_s5 + $0x80] ss:$8 sps:$4 sm:$0xff]   ;;  %v3259_v5 = vld [vmem:[%s3693_s7 + $0x70] sm:$0xff]  }
 0x134   : > { %v671_v14 = vpop.f32.mrf.mxu0  ;;  %1114 = vmatprep.mubr.bf16.mxu1 %v831_v9  ;;  %810 = vst [vmem:[%s3167_s1 + $0xa0] sm:$0xff] %v778_v13  ;;  %2432 = vmatprep.subr.bf16.mxu1 %v3259_v5  ;;  %v3271_v7 = vld [vmem:[%s3693_s7 + $0x68] sm:$0xff]   ;;  %v3283_v9 = vld [vmem:[%s3693_s7 + $0x60] sm:$0xff]  }
 0x135   : > { %vm716_vm9 = vcmp.gt.f32.partialorder %v670_v12, 0.0  ;;  %v748_v15 = vmul.f32 0.2, %v670_v12  ;;  %v672_v16 = vadd.f32 %v671_v14, %v3157_v38  ;;  %1115 = vmatmul.mubr.bf16.gmra.mxu1 %v830_v10  ;;  %v779_v17 = vsel %vm715_vm8, %v668_v6, %v747_v11  ;;  %v3266_v6 = vld [vmem:[%s3693_s7 + $0x30] sm:$0xff]   ;;  %v3278_v8 = vld [vmem:[%s3693_s7 + $0x28] sm:$0xff]   ;;  %v3290_v10 = vld [vmem:[%s3693_s7 + $0x20] sm:$0xff]  }
 0x136   : > { %v675_v18 = vpop.f32.mrf.mxu0  ;;  %811 = vst [vmem:[%s3167_s1 + $0xa8] sm:$0xff] %v779_v17  ;;  %2440 = vmatpush3.bf16.msra.mxu1 %v3266_v6  ;;  %v3295_v11 = vld [vmem:[%s3693_s7 + $0x58] sm:$0xff]  }
 0x137   : > { %vm717_vm10 = vcmp.gt.f32.partialorder %v672_v16, 0.0  ;;  %v749_v19 = vmul.f32 0.2, %v672_v16  ;;  %v676_v20 = vadd.f32 %v675_v18, %v3153_v37  ;;  %v780_v21 = vsel %vm716_vm9, %v670_v12, %v748_v15  ;;  %2433 = vmatprep.subr.bf16.mxu1 %v3271_v7  ;;  %v870_v12 = vld [vmem:[%s3694_s4] sm:$0x3]  ;;  %s2663_s4 = scalar_lea.vmem %s3497_s0, 4096 }
 0x138   : > { %v677_v22 = vpop.f32.mrf.mxu0  ;;  %812 = vst [vmem:[%s3167_s1 + $0xb0] sm:$0xff] %v780_v21  ;;  %v832_v28 = vpack.c.bf16 %v780_v21, %v778_v13  ;;  %v3303_v13 = vrot.slane %v870_v12, %v3145_v34  ;;  %v3306_v14 = vrot.slane %v870_v12, %v3150_v36  ;;  %p2664_p8 = scmp.ne.s32.totalorder %s3497_s0, %s2663_s4 }
 0x139   : > { %vm718_vm11 = vcmp.gt.f32.partialorder %v676_v20, 0.0  ;;  %v750_v23 = vmul.f32 0.2, %v676_v20  ;;  %v678_v24 = vadd.f32 %v677_v22, %v3157_v38  ;;  %v781_v25 = vsel %vm717_vm10, %v672_v16, %v749_v19 }
 0x13a   : > { %v679_v26 = vpop.f32.mrf.mxu0  ;;  %813 = vst [vmem:[%s3167_s1 + $0xb8] sm:$0xff] %v781_v25  ;;  %v833_v27 = vpack.c.bf16 %v781_v25, %v779_v17  ;;  %2441 = vmatpush3.bf16.msra.mxu1 %v3278_v8  ;;  %p2665_p9 = pnand %p2664_p8, %p2900_p5 }
 0x13b   : > { %vm719_vm12 = vcmp.gt.f32.partialorder %v678_v24, 0.0  ;;  %v751_v29 = vmul.f32 0.2, %v678_v24  ;;  %v680_v30 = vadd.f32 %v679_v26, %v3153_v37  ;;  %v782_v31 = vsel %vm718_vm11, %v676_v20, %v750_v23  ;;  %2434 = vmatprep.subr.bf16.mxu1 %v3283_v9 }
 0x13c   : > { %v681_v32 = vpop.f32.mrf.mxu0  ;;  %1124 = vmatprep.mubr.bf16.mxu1 %v833_v27  ;;  %814 = vst [vmem:[%s3167_s1 + $0xc0] sm:$0xff] %v782_v31  ;;  %p2666_p10 = pneg %p2665_p9 }
 0x13d   : > { %vm720_vm13 = vcmp.gt.f32.partialorder %v680_v30, 0.0  ;;  %v752_v33 = vmul.f32 0.2, %v680_v30  ;;  %v682_v35 = vadd.f32 %v681_v32, %v3157_v38  ;;  %1125 = vmatmul.mubr.bf16.gmra.mxu1 %v832_v28  ;;  %v783_v39 = vsel %vm719_vm12, %v678_v24, %v751_v29 }
 0x13e   : > { %v685_v40 = vpop.f32.mrf.mxu0  ;;  %815 = vst [vmem:[%s3167_s1 + $0xc8] sm:$0xff] %v783_v39  ;;  %2442 = vmatpush3.bf16.msra.mxu1 %v3290_v10 }
 0x13f   : > { %vm721_vm14 = vcmp.gt.f32.partialorder %v682_v35, 0.0  ;;  %v753_v41 = vmul.f32 0.2, %v682_v35  ;;  %v686_v42 = vadd.f32 %v685_v40, %v3153_v37  ;;  %v784_v43 = vsel %vm720_vm13, %v680_v30, %v752_v33  ;;  %2435 = vmatprep.subr.bf16.mxu1 %v3295_v11 }
 0x140   : > { %v687_v44 = vpop.f32.mrf.mxu0  ;;  %816 = vst [vmem:[%s3167_s1 + $0xd0] sm:$0xff] %v784_v43  ;;  %v834_v50 = vpack.c.bf16 %v784_v43, %v782_v31 }
 0x141   : > { %vm722_vm15 = vcmp.gt.f32.partialorder %v686_v42, 0.0  ;;  %v754_v45 = vmul.f32 0.2, %v686_v42  ;;  %v688_v46 = vadd.f32 %v687_v44, %v3157_v38  ;;  %v785_v47 = vsel %vm721_vm14, %v682_v35, %v753_v41 }
 0x142   : > { %v689_v48 = vpop.f32.mrf.mxu0  ;;  %817 = vst [vmem:[%s3167_s1 + $0xd8] sm:$0xff] %v785_v47  ;;  %v835_v49 = vpack.c.bf16 %v785_v47, %v783_v39 }
 0x143   : > { %vm723_vm0 = vcmp.gt.f32.partialorder %v688_v46, 0.0  ;;  %v755_v51 = vmul.f32 0.2, %v688_v46  ;;  %v690_v52 = vadd.f32 %v689_v48, %v3153_v37  ;;  %v786_v53 = vsel %vm722_vm15, %v686_v42, %v754_v45 }
 0x144   : > { %v691_v54 = vpop.f32.mrf.mxu0  ;;  %1134 = vmatprep.mubr.bf16.mxu1 %v835_v49  ;;  %818 = vst [vmem:[%s3167_s1 + $0xe0] sm:$0xff] %v786_v53 }
 0x145   : > { %vm724_vm1 = vcmp.gt.f32.partialorder %v690_v52, 0.0  ;;  %v756_v55 = vmul.f32 0.2, %v690_v52  ;;  %v692_v56 = vadd.f32 %v691_v54, %v3157_v38  ;;  %1135 = vmatmul.mubr.bf16.gmra.mxu1 %v834_v50  ;;  %v787_v57 = vsel %vm723_vm0, %v688_v46, %v755_v51  ;;  %v2612_v38 = vld [vmem:[%s3691_s5 + $0xa0] ss:$8 sps:$4 sm:$0xff]  }
 0x146   : > { %819 = vst [vmem:[%s3167_s1 + $0xe8] sm:$0xff] %v787_v57  ;;  %1530 = vmatpush2.bf16.msra.mxu0 %v2612_v38 }
 0x147   : > { %vm725_vm2 = vcmp.gt.f32.partialorder %v692_v56, 0.0  ;;  %v757_v58 = vmul.f32 0.2, %v692_v56  ;;  %v788_v59 = vsel %vm724_vm1, %v690_v52, %v756_v55  ;;  %1531 = vmatprep.subr.bf16.mxu0 %v2617_v63 }
 0x148   : > { %820 = vst [vmem:[%s3167_s1 + $0xf0] sm:$0xff] %v788_v59  ;;  %v836_v37 = vpack.c.bf16 %v788_v59, %v786_v53 }
 0x149   : > { %v789_v60 = vsel %vm725_vm2, %v692_v56, %v757_v58 }
 0x14a   : > { %821 = vst [vmem:[%s3167_s1 + $0xf8] sm:$0xff] %v789_v60  ;;  %v837_v61 = vpack.c.bf16 %v789_v60, %v787_v57  ;;  %1532 = vmatpush2.bf16.msra.mxu0 %v2615_v1 }
 0x14b   : > { %1533 = vmatprep.subr.bf16.mxu0 %v2620_v2 }
 0x14c   : > { %1144 = vmatprep.mubr.bf16.mxu1 %v837_v61 }
 0x14d   : > { %1145 = vmatmul.mubr.bf16.gmra.mxu1 %v836_v37 }
 0x14e   : > { %1534 = vmatpush2.bf16.msra.mxu0 %v2618_v0 }
 0x14f   : > { %2367 = vmatprep.subr.bf16.mxu0 %v2621_v3 }
 0x1d5   : > { %v1076_v15 = vpop.f32.mrf.mxu1 }
 0x1d6   : > { %v1077_v16 = vadd.f32 %v1076_v15, %v3303_v13 }
 0x1d7   : > { %v1078_v17 = vpop.f32.mrf.mxu1 }
 0x1d8   : > { %vm1155_vm3 = vcmp.gt.f32.partialorder %v1077_v16, 0.0  ;;  %v1187_v18 = vmul.f32 0.2, %v1077_v16  ;;  %v1079_v19 = vadd.f32 %v1078_v17, %v3306_v14 }
 0x1d9   : > { %v1080_v20 = vpop.f32.mrf.mxu1 }
 0x1da   : > { %v1219_v21 = vsel %vm1155_vm3, %v1077_v16, %v1187_v18  ;;  %vm1156_vm4 = vcmp.gt.f32.partialorder %v1079_v19, 0.0  ;;  %v1188_v22 = vmul.f32 0.2, %v1079_v19  ;;  %v1081_v23 = vadd.f32 %v1080_v20, %v3303_v13 }
 0x1db   : > { %1251 = vst [vmem:[%s3312_s17] sm:$0xff] %v1219_v21  ;;  %v1082_v24 = vpop.f32.mrf.mxu1 }
 0x1dc   : > { %vm1157_vm5 = vcmp.gt.f32.partialorder %v1081_v23, 0.0  ;;  %v1189_v25 = vmul.f32 0.2, %v1081_v23  ;;  %v1083_v26 = vadd.f32 %v1082_v24, %v3306_v14  ;;  %v1220_v27 = vsel %vm1156_vm4, %v1079_v19, %v1188_v22 }
 0x1dd   : > { %v1086_v28 = vpop.f32.mrf.mxu1  ;;  %1252 = vst [vmem:[%s3312_s17 + $0x8] sm:$0xff] %v1220_v27 }
 0x1de   : > { %v1221_v29 = vsel %vm1157_vm5, %v1081_v23, %v1189_v25  ;;  %vm1158_vm6 = vcmp.gt.f32.partialorder %v1083_v26, 0.0  ;;  %v1190_v30 = vmul.f32 0.2, %v1083_v26  ;;  %v1087_v31 = vadd.f32 %v1086_v28, %v3303_v13 }
 0x1df   : > { %1253 = vst [vmem:[%s3312_s17 + $0x10] sm:$0xff] %v1221_v29  ;;  %v1088_v32 = vpop.f32.mrf.mxu1  ;;  %v1283_v40 = vpack.c.bf16 %v1221_v29, %v1219_v21 }
 0x1e0   : > { %vm1159_vm7 = vcmp.gt.f32.partialorder %v1087_v31, 0.0  ;;  %v1191_v33 = vmul.f32 0.2, %v1087_v31  ;;  %v1089_v35 = vadd.f32 %v1088_v32, %v3306_v14  ;;  %v1222_v39 = vsel %vm1158_vm6, %v1083_v26, %v1190_v30 }
 0x1e1   : > { %v1090_v41 = vpop.f32.mrf.mxu1  ;;  %1254 = vst [vmem:[%s3312_s17 + $0x18] sm:$0xff] %v1222_v39  ;;  %v1284_v42 = vpack.c.bf16 %v1222_v39, %v1220_v27 }
 0x1e2   : > { %vm1160_vm8 = vcmp.gt.f32.partialorder %v1089_v35, 0.0  ;;  %v1192_v43 = vmul.f32 0.2, %v1089_v35  ;;  %v1091_v44 = vadd.f32 %v1090_v41, %v3303_v13  ;;  %v1223_v45 = vsel %vm1159_vm7, %v1087_v31, %v1191_v33 }
 0x1e3   : > { %v1092_v46 = vpop.f32.mrf.mxu1  ;;  %1535 = vmatprep.mubr.bf16.mxu0 %v1284_v42  ;;  %1255 = vst [vmem:[%s3312_s17 + $0x20] sm:$0xff] %v1223_v45 }
 0x1e4   : > { %vm1161_vm9 = vcmp.gt.f32.partialorder %v1091_v44, 0.0  ;;  %v1193_v47 = vmul.f32 0.2, %v1091_v44  ;;  %v1093_v48 = vadd.f32 %v1092_v46, %v3306_v14  ;;  %1536 = vmatmul.mubr.bf16.vlgmr.msra.gmra.mxu0 %v1283_v40  ;;  %v1224_v49 = vsel %vm1160_vm8, %v1089_v35, %v1192_v43 }
 0x1e5   : > { %v1096_v50 = vpop.f32.mrf.mxu1  ;;  %1256 = vst [vmem:[%s3312_s17 + $0x28] sm:$0xff] %v1224_v49  ;;  %2368 = vmatpush3.bf16.msra.mxu0 %v3254_v4 }
 0x1e6   : > { %vm1162_vm10 = vcmp.gt.f32.partialorder %v1093_v48, 0.0  ;;  %v1194_v51 = vmul.f32 0.2, %v1093_v48  ;;  %v1097_v52 = vadd.f32 %v1096_v50, %v3303_v13  ;;  %v1225_v53 = vsel %vm1161_vm9, %v1091_v44, %v1193_v47  ;;  %2369 = vmatprep.subr.bf16.mxu0 %v3259_v5 }
 0x1e7   : > { %v1098_v54 = vpop.f32.mrf.mxu1  ;;  %1257 = vst [vmem:[%s3312_s17 + $0x30] sm:$0xff] %v1225_v53  ;;  %v1285_v60 = vpack.c.bf16 %v1225_v53, %v1223_v45 }
 0x1e8   : > { %vm1163_vm11 = vcmp.gt.f32.partialorder %v1097_v52, 0.0  ;;  %v1195_v55 = vmul.f32 0.2, %v1097_v52  ;;  %v1099_v56 = vadd.f32 %v1098_v54, %v3306_v14  ;;  %v1226_v57 = vsel %vm1162_vm10, %v1093_v48, %v1194_v51 }
 0x1e9   : > { %v1100_v58 = vpop.f32.mrf.mxu1  ;;  %1258 = vst [vmem:[%s3312_s17 + $0x38] sm:$0xff] %v1226_v57  ;;  %v1286_v59 = vpack.c.bf16 %v1226_v57, %v1224_v49  ;;  %2370 = vmatpush3.bf16.msra.mxu0 %v3266_v6 }
 0x1ea   : > { %vm1164_vm12 = vcmp.gt.f32.partialorder %v1099_v56, 0.0  ;;  %v1196_v61 = vmul.f32 0.2, %v1099_v56  ;;  %v1101_v37 = vadd.f32 %v1100_v58, %v3303_v13  ;;  %v1227_v62 = vsel %vm1163_vm11, %v1097_v52, %v1195_v55  ;;  %2371 = vmatprep.subr.bf16.mxu0 %v3271_v7 }
 0x1eb   : > { %v1102_v38 = vpop.f32.mrf.mxu1  ;;  %1545 = vmatprep.mubr.bf16.mxu0 %v1286_v59  ;;  %1259 = vst [vmem:[%s3312_s17 + $0x40] sm:$0xff] %v1227_v62 }
 0x1ec   : > { %vm1165_vm13 = vcmp.gt.f32.partialorder %v1101_v37, 0.0  ;;  %v1197_v63 = vmul.f32 0.2, %v1101_v37  ;;  %v1103_v1 = vadd.f32 %v1102_v38, %v3306_v14  ;;  %1546 = vmatmul.mubr.bf16.gmra.mxu0 %v1285_v60  ;;  %v1228_v2 = vsel %vm1164_vm12, %v1099_v56, %v1196_v61 }
 0x1ed   : > { %v1106_v0 = vpop.f32.mrf.mxu1  ;;  %1260 = vst [vmem:[%s3312_s17 + $0x48] sm:$0xff] %v1228_v2  ;;  %2372 = vmatpush3.bf16.msra.mxu0 %v3278_v8 }
 0x1ee   : > { %vm1166_vm14 = vcmp.gt.f32.partialorder %v1103_v1, 0.0  ;;  %v1198_v3 = vmul.f32 0.2, %v1103_v1  ;;  %v1107_v4 = vadd.f32 %v1106_v0, %v3303_v13  ;;  %v1229_v5 = vsel %vm1165_vm13, %v1101_v37, %v1197_v63  ;;  %2373 = vmatprep.subr.bf16.mxu0 %v3283_v9 }
 0x1ef   : > { %v1108_v6 = vpop.f32.mrf.mxu1  ;;  %1261 = vst [vmem:[%s3312_s17 + $0x50] sm:$0xff] %v1229_v5  ;;  %v1287_v18 = vpack.c.bf16 %v1229_v5, %v1227_v62 }
 0x1f0   : > { %vm1167_vm15 = vcmp.gt.f32.partialorder %v1107_v4, 0.0  ;;  %v1199_v7 = vmul.f32 0.2, %v1107_v4  ;;  %v1109_v12 = vadd.f32 %v1108_v6, %v3306_v14  ;;  %v1230_v15 = vsel %vm1166_vm14, %v1103_v1, %v1198_v3 }
 0x1f1   : > { %v1110_v16 = vpop.f32.mrf.mxu1  ;;  %1262 = vst [vmem:[%s3312_s17 + $0x58] sm:$0xff] %v1230_v15  ;;  %v1288_v17 = vpack.c.bf16 %v1230_v15, %v1228_v2  ;;  %2374 = vmatpush3.bf16.msra.mxu0 %v3290_v10 }
 0x1f2   : > { %vm1168_vm0 = vcmp.gt.f32.partialorder %v1109_v12, 0.0  ;;  %v1200_v8 = vmul.f32 0.2, %v1109_v12  ;;  %v1111_v19 = vadd.f32 %v1110_v16, %v3303_v13  ;;  %v1231_v9 = vsel %vm1167_vm15, %v1107_v4, %v1199_v7  ;;  %2375 = vmatprep.subr.bf16.mxu0 %v3295_v11 }
 0x1f3   : > { %v1112_v20 = vpop.f32.mrf.mxu1  ;;  %1555 = vmatprep.mubr.bf16.mxu0 %v1288_v17  ;;  %1263 = vst [vmem:[%s3312_s17 + $0x60] sm:$0xff] %v1231_v9 }
 0x1f4   : > { %vm1169_vm1 = vcmp.gt.f32.partialorder %v1111_v19, 0.0  ;;  %v1201_v21 = vmul.f32 0.2, %v1111_v19  ;;  %v1113_v22 = vadd.f32 %v1112_v20, %v3306_v14  ;;  %1556 = vmatmul.mubr.bf16.gmra.mxu0 %v1287_v18  ;;  %v1232_v23 = vsel %vm1168_vm0, %v1109_v12, %v1200_v8 }
 0x1f5   : > { %v1116_v24 = vpop.f32.mrf.mxu1  ;;  %1264 = vst [vmem:[%s3312_s17 + $0x68] sm:$0xff] %v1232_v23 }
 0x1f6   : > { %vm1170_vm2 = vcmp.gt.f32.partialorder %v1113_v22, 0.0  ;;  %v1202_v10 = vmul.f32 0.2, %v1113_v22  ;;  %v1117_v25 = vadd.f32 %v1116_v24, %v3303_v13  ;;  %v1233_v26 = vsel %vm1169_vm1, %v1111_v19, %v1201_v21 }
 0x1f7   : > { %v1118_v27 = vpop.f32.mrf.mxu1  ;;  %1265 = vst [vmem:[%s3312_s17 + $0x70] sm:$0xff] %v1233_v26  ;;  %v1289_v32 = vpack.c.bf16 %v1233_v26, %v1231_v9 }
 0x1f8   : > { %vm1171_vm3 = vcmp.gt.f32.partialorder %v1117_v25, 0.0  ;;  %v1203_v11 = vmul.f32 0.2, %v1117_v25  ;;  %v1119_v28 = vadd.f32 %v1118_v27, %v3306_v14  ;;  %v1234_v29 = vsel %vm1170_vm2, %v1113_v22, %v1202_v10 }
 0x1f9   : > { %v1120_v30 = vpop.f32.mrf.mxu1  ;;  %1266 = vst [vmem:[%s3312_s17 + $0x78] sm:$0xff] %v1234_v29  ;;  %v1290_v31 = vpack.c.bf16 %v1234_v29, %v1232_v23 }
 0x1fa   : > { %vm1172_vm4 = vcmp.gt.f32.partialorder %v1119_v28, 0.0  ;;  %v1204_v33 = vmul.f32 0.2, %v1119_v28  ;;  %v1121_v35 = vadd.f32 %v1120_v30, %v3303_v13  ;;  %v1235_v39 = vsel %vm1171_vm3, %v1117_v25, %v1203_v11 }
 0x1fb   : > { %v1122_v40 = vpop.f32.mrf.mxu1  ;;  %1565 = vmatprep.mubr.bf16.mxu0 %v1290_v31  ;;  %1267 = vst [vmem:[%s3312_s17 + $0x80] sm:$0xff] %v1235_v39 }
 0x1fc   : > { %vm1173_vm5 = vcmp.gt.f32.partialorder %v1121_v35, 0.0  ;;  %v1205_v41 = vmul.f32 0.2, %v1121_v35  ;;  %v1123_v42 = vadd.f32 %v1122_v40, %v3306_v14  ;;  %1566 = vmatmul.mubr.bf16.gmra.mxu0 %v1289_v32  ;;  %v1236_v43 = vsel %vm1172_vm4, %v1119_v28, %v1204_v33 }
 0x1fd   : > { %v1126_v44 = vpop.f32.mrf.mxu1  ;;  %1268 = vst [vmem:[%s3312_s17 + $0x88] sm:$0xff] %v1236_v43 }
 0x1fe   : > { %vm1174_vm6 = vcmp.gt.f32.partialorder %v1123_v42, 0.0  ;;  %v1206_v45 = vmul.f32 0.2, %v1123_v42  ;;  %v1127_v46 = vadd.f32 %v1126_v44, %v3303_v13  ;;  %v1237_v47 = vsel %vm1173_vm5, %v1121_v35, %v1205_v41  ;;  %v2633_v44 = vld [vmem:[%s3693_s7 + $0x48] sm:$0xff]  }
 0x1ff   : > { %v1128_v48 = vpop.f32.mrf.mxu1  ;;  %1269 = vst [vmem:[%s3312_s17 + $0x90] sm:$0xff] %v1237_v47  ;;  %v1291_v54 = vpack.c.bf16 %v1237_v47, %v1235_v39  ;;  %v2636_v47 = vld [vmem:[%s3693_s7] sm:$0xff]  }
 0x200   : > { %vm1175_vm7 = vcmp.gt.f32.partialorder %v1127_v46, 0.0  ;;  %v1207_v49 = vmul.f32 0.2, %v1127_v46  ;;  %v1129_v50 = vadd.f32 %v1128_v48, %v3306_v14  ;;  %v1238_v51 = vsel %vm1174_vm6, %v1123_v42, %v1206_v45  ;;  %v2630_v42 = vld [vmem:[%s3693_s7 + $0x18] sm:$0xff]   ;;  %v2634_v45 = vld [vmem:[%s3693_s7 + $0x8] sm:$0xff]  }
 0x201   : > { %v1130_v52 = vpop.f32.mrf.mxu1  ;;  %1270 = vst [vmem:[%s3312_s17 + $0x98] sm:$0xff] %v1238_v51  ;;  %v1292_v53 = vpack.c.bf16 %v1238_v51, %v1236_v43  ;;  %2376 = vmatpush3.bf16.msra.mxu0 %v2630_v42  ;;  %2443 = vmatpush3.bf16.msra.mxu1 %v2630_v42  ;;  %v2632_v43 = vld [vmem:[%s3693_s7 + $0x10] sm:$0xff]   ;;  %v1331_v48 = vld [vmem:[%s3695_s6] sm:$0x3] }
 0x202   : > { %vm1176_vm8 = vcmp.gt.f32.partialorder %v1129_v50, 0.0  ;;  %v1208_v55 = vmul.f32 0.2, %v1129_v50  ;;  %v1131_v56 = vadd.f32 %v1130_v52, %v3303_v13  ;;  %v1239_v57 = vsel %vm1175_vm7, %v1127_v46, %v1207_v49  ;;  %v2635_v46 = vld [vmem:[%s3693_s7 + $0x40] sm:$0xff]  }
 0x203   : > { %v1132_v58 = vpop.f32.mrf.mxu1  ;;  %1575 = vmatprep.mubr.bf16.mxu0 %v1292_v53  ;;  %1271 = vst [vmem:[%s3312_s17 + $0xa0] sm:$0xff] %v1239_v57  ;;  %v3408_v49 = vrot.slane %v1331_v48, %v3145_v34 }
 0x204   : > { %vm1177_vm9 = vcmp.gt.f32.partialorder %v1131_v56, 0.0  ;;  %v1209_v59 = vmul.f32 0.2, %v1131_v56  ;;  %v1133_v60 = vadd.f32 %v1132_v58, %v3306_v14  ;;  %1576 = vmatmul.mubr.bf16.gmra.mxu0 %v1291_v54  ;;  %v1240_v61 = vsel %vm1176_vm8, %v1129_v50, %v1208_v55 }
 0x205   : > { %v1136_v37 = vpop.f32.mrf.mxu1  ;;  %1272 = vst [vmem:[%s3312_s17 + $0xa8] sm:$0xff] %v1240_v61  ;;  %v3411_v50 = vrot.slane %v1331_v48, %v3150_v36 }
 0x206   : > { %vm1178_vm10 = vcmp.gt.f32.partialorder %v1133_v60, 0.0  ;;  %v1210_v62 = vmul.f32 0.2, %v1133_v60  ;;  %v1137_v38 = vadd.f32 %v1136_v37, %v3303_v13  ;;  %v1241_v63 = vsel %vm1177_vm9, %v1131_v56, %v1209_v59 }
 0x207   : > { %v1138_v1 = vpop.f32.mrf.mxu1  ;;  %1273 = vst [vmem:[%s3312_s17 + $0xb0] sm:$0xff] %v1241_v63  ;;  %v1293_v6 = vpack.c.bf16 %v1241_v63, %v1239_v57 }
 0x208   : > { %vm1179_vm11 = vcmp.gt.f32.partialorder %v1137_v38, 0.0  ;;  %v1211_v2 = vmul.f32 0.2, %v1137_v38  ;;  %v1139_v0 = vadd.f32 %v1138_v1, %v3306_v14  ;;  %v1242_v3 = vsel %vm1178_vm10, %v1133_v60, %v1210_v62 }
 0x209   : > { %v1140_v4 = vpop.f32.mrf.mxu1  ;;  %1274 = vst [vmem:[%s3312_s17 + $0xb8] sm:$0xff] %v1242_v3  ;;  %v1294_v5 = vpack.c.bf16 %v1242_v3, %v1240_v61 }
 0x20a   : > { %vm1180_vm12 = vcmp.gt.f32.partialorder %v1139_v0, 0.0  ;;  %v1212_v7 = vmul.f32 0.2, %v1139_v0  ;;  %v1141_v12 = vadd.f32 %v1140_v4, %v3303_v13  ;;  %v1243_v15 = vsel %vm1179_vm11, %v1137_v38, %v1211_v2 }
 0x20b   : > { %v1142_v16 = vpop.f32.mrf.mxu1  ;;  %1585 = vmatprep.mubr.bf16.mxu0 %v1294_v5  ;;  %1275 = vst [vmem:[%s3312_s17 + $0xc0] sm:$0xff] %v1243_v15 }
 0x20c   : > { %vm1181_vm13 = vcmp.gt.f32.partialorder %v1141_v12, 0.0  ;;  %v1213_v17 = vmul.f32 0.2, %v1141_v12  ;;  %v1143_v18 = vadd.f32 %v1142_v16, %v3306_v14  ;;  %1586 = vmatmul.mubr.bf16.gmra.mxu0 %v1293_v6  ;;  %v1244_v8 = vsel %vm1180_vm12, %v1139_v0, %v1212_v7 }
 0x20d   : > { %v1146_v19 = vpop.f32.mrf.mxu1  ;;  %1276 = vst [vmem:[%s3312_s17 + $0xc8] sm:$0xff] %v1244_v8 }
 0x20e   : > { %vm1182_vm14 = vcmp.gt.f32.partialorder %v1143_v18, 0.0  ;;  %v1214_v9 = vmul.f32 0.2, %v1143_v18  ;;  %v1147_v20 = vadd.f32 %v1146_v19, %v3303_v13  ;;  %v1245_v21 = vsel %vm1181_vm13, %v1141_v12, %v1213_v17 }
 0x20f   : > { %v1148_v22 = vpop.f32.mrf.mxu1  ;;  %1277 = vst [vmem:[%s3312_s17 + $0xd0] sm:$0xff] %v1245_v21  ;;  %v1295_v27 = vpack.c.bf16 %v1245_v21, %v1243_v15 }
 0x210   : > { %vm1183_vm15 = vcmp.gt.f32.partialorder %v1147_v20, 0.0  ;;  %v1215_v23 = vmul.f32 0.2, %v1147_v20  ;;  %v1149_v24 = vadd.f32 %v1148_v22, %v3306_v14  ;;  %v1246_v10 = vsel %vm1182_vm14, %v1143_v18, %v1214_v9 }
 0x211   : > { %v1150_v25 = vpop.f32.mrf.mxu1  ;;  %1278 = vst [vmem:[%s3312_s17 + $0xd8] sm:$0xff] %v1246_v10  ;;  %v1296_v26 = vpack.c.bf16 %v1246_v10, %v1244_v8 }
 0x212   : > { %vm1184_vm0 = vcmp.gt.f32.partialorder %v1149_v24, 0.0  ;;  %v1216_v11 = vmul.f32 0.2, %v1149_v24  ;;  %v1151_v28 = vadd.f32 %v1150_v25, %v3303_v13  ;;  %v1247_v29 = vsel %vm1183_vm15, %v1147_v20, %v1215_v23 }
 0x213   : > { %v1152_v30 = vpop.f32.mrf.mxu1  ;;  %1595 = vmatprep.mubr.bf16.mxu0 %v1296_v26  ;;  %1279 = vst [vmem:[%s3312_s17 + $0xe0] sm:$0xff] %v1247_v29 }
 0x214   : > { %vm1185_vm1 = vcmp.gt.f32.partialorder %v1151_v28, 0.0  ;;  %v1217_v31 = vmul.f32 0.2, %v1151_v28  ;;  %v1153_v32 = vadd.f32 %v1152_v30, %v3306_v14  ;;  %1596 = vmatmul.mubr.bf16.gmra.mxu0 %v1295_v27  ;;  %v1248_v33 = vsel %vm1184_vm0, %v1149_v24, %v1216_v11  ;;  %v2631_v14 = vld [vmem:[%s3693_s7 + $0x50] sm:$0xff]  }
 0x215   : > { %1280 = vst [vmem:[%s3312_s17 + $0xe8] sm:$0xff] %v1248_v33  ;;  %2377 = vmatprep.subr.bf16.mxu0 %v2631_v14  ;;  %2436 = vmatprep.subr.bf16.mxu1 %v2631_v14 }
 0x216   : > { %vm1186_vm2 = vcmp.gt.f32.partialorder %v1153_v32, 0.0  ;;  %v1218_v35 = vmul.f32 0.2, %v1153_v32  ;;  %v1249_v39 = vsel %vm1185_vm1, %v1151_v28, %v1217_v31  ;;  %2378 = vmatpush3.bf16.msra.mxu0 %v2632_v43  ;;  %2444 = vmatpush3.bf16.msra.mxu1 %v2632_v43 }
 0x217   : > { %1281 = vst [vmem:[%s3312_s17 + $0xf0] sm:$0xff] %v1249_v39  ;;  %v1297_v13 = vpack.c.bf16 %v1249_v39, %v1247_v29  ;;  %2379 = vmatprep.subr.bf16.mxu0 %v2633_v44  ;;  %2437 = vmatprep.subr.bf16.mxu1 %v2633_v44 }
 0x218   : > { %v1250_v40 = vsel %vm1186_vm2, %v1153_v32, %v1218_v35 }
 0x219   : > { %1282 = vst [vmem:[%s3312_s17 + $0xf8] sm:$0xff] %v1250_v40  ;;  %v1298_v41 = vpack.c.bf16 %v1250_v40, %v1248_v33  ;;  %s2669_s17 = scalar_lea.vmem %s2668_s18, 8192 }
 0x21a   : > { %2380 = vmatpush3.bf16.msra.mxu0 %v2634_v45  ;;  %2445 = vmatpush3.bf16.msra.mxu1 %v2634_v45  ;;  %p2671_p12 = scmp.lt.s32.totalorder %s2669_s17, %s2663_s4 }
 0x21b   : > { %1605 = vmatprep.mubr.bf16.mxu0 %v1298_v41  ;;  %2381 = vmatprep.subr.bf16.mxu0 %v2635_v46 }
 0x21c   : > { %1606 = vmatmul.mubr.bf16.gmra.mxu0 %v1297_v13  ;;  %2438 = vmatprep.subr.bf16.mxu1 %v2635_v46  ;;  %p2672_p13 = por %p2671_p12, %p2670_p11 }
 0x21e   : > { %2382 = vmatpush3.bf16.msra.mxu0 %v2636_v47  ;;  %2446 = vmatpush3.bf16.msra.mxu1 %v2636_v47  ;;  %p2673_p0 = pnand %p2672_p13, %p2666_p10 }
 0x2a4   : > { %v1537_v51 = vpop.f32.mrf.mxu0 }
 0x2a5   : > { %v1538_v52 = vadd.f32 %v1537_v51, %v3408_v49 }
 0x2a6   : > { %v1539_v53 = vpop.f32.mrf.mxu0 }
 0x2a7   : > { %vm1616_vm3 = vcmp.gt.f32.partialorder %v1538_v52, 0.0  ;;  %v1648_v54 = vmul.f32 0.2, %v1538_v52  ;;  %v1540_v55 = vadd.f32 %v1539_v53, %v3411_v50 }
 0x2a8   : > { %v1541_v56 = vpop.f32.mrf.mxu0 }
 0x2a9   : > { %v1680_v57 = vsel %vm1616_vm3, %v1538_v52, %v1648_v54  ;;  %vm1617_vm4 = vcmp.gt.f32.partialorder %v1540_v55, 0.0  ;;  %v1649_v58 = vmul.f32 0.2, %v1540_v55  ;;  %v1542_v59 = vadd.f32 %v1541_v56, %v3408_v49 }
 0x2aa   : > { %1712 = vst [vmem:[%s3417_s26] sm:$0xff] %v1680_v57  ;;  %v1543_v34 = vpop.f32.mrf.mxu0 }
 0x2ab   : > { %vm1618_vm5 = vcmp.gt.f32.partialorder %v1542_v59, 0.0  ;;  %v1650_v36 = vmul.f32 0.2, %v1542_v59  ;;  %v1544_v60 = vadd.f32 %v1543_v34, %v3411_v50  ;;  %v1681_v61 = vsel %vm1617_vm4, %v1540_v55, %v1649_v58 }
 0x2ac   : > { %v1547_v37 = vpop.f32.mrf.mxu0  ;;  %1713 = vst [vmem:[%s3417_s26 + $0x8] sm:$0xff] %v1681_v61 }
 0x2ad   : > { %v1682_v62 = vsel %vm1618_vm5, %v1542_v59, %v1650_v36  ;;  %vm1619_vm6 = vcmp.gt.f32.partialorder %v1544_v60, 0.0  ;;  %v1651_v38 = vmul.f32 0.2, %v1544_v60  ;;  %v1548_v63 = vadd.f32 %v1547_v37, %v3408_v49 }
 0x2ae   : > { %1714 = vst [vmem:[%s3417_s26 + $0x10] sm:$0xff] %v1682_v62  ;;  %v1549_v1 = vpop.f32.mrf.mxu0  ;;  %v1744_v4 = vpack.c.bf16 %v1682_v62, %v1680_v57 }
 0x2af   : > { %vm1620_vm7 = vcmp.gt.f32.partialorder %v1548_v63, 0.0  ;;  %v1652_v2 = vmul.f32 0.2, %v1548_v63  ;;  %v1550_v0 = vadd.f32 %v1549_v1, %v3411_v50  ;;  %v1683_v3 = vsel %vm1619_vm6, %v1544_v60, %v1651_v38 }
 0x2b0   : > { %v1551_v5 = vpop.f32.mrf.mxu0  ;;  %1715 = vst [vmem:[%s3417_s26 + $0x18] sm:$0xff] %v1683_v3  ;;  %v1745_v6 = vpack.c.bf16 %v1683_v3, %v1681_v61 }
 0x2b1   : > { %vm1621_vm8 = vcmp.gt.f32.partialorder %v1550_v0, 0.0  ;;  %v1653_v7 = vmul.f32 0.2, %v1550_v0  ;;  %v1552_v12 = vadd.f32 %v1551_v5, %v3408_v49  ;;  %v1684_v15 = vsel %vm1620_vm7, %v1548_v63, %v1652_v2 }
 0x2b2   : > { %v1553_v16 = vpop.f32.mrf.mxu0  ;;  %1927 = vmatprep.mubr.bf16.mxu0 %v1745_v6  ;;  %1716 = vst [vmem:[%s3417_s26 + $0x20] sm:$0xff] %v1684_v15 }
 0x2b3   : > { %vm1622_vm9 = vcmp.gt.f32.partialorder %v1552_v12, 0.0  ;;  %v1654_v17 = vmul.f32 0.2, %v1552_v12  ;;  %v1554_v18 = vadd.f32 %v1553_v16, %v3411_v50  ;;  %1928 = vmatmul.mubr.bf16.vlgmr.msra.gmra.mxu0 %v1744_v4  ;;  %v1685_v8 = vsel %vm1621_vm8, %v1550_v0, %v1653_v7 }
 0x2b4   : > { %v1557_v19 = vpop.f32.mrf.mxu0  ;;  %1717 = vst [vmem:[%s3417_s26 + $0x28] sm:$0xff] %v1685_v8 }
 0x2b5   : > { %vm1623_vm10 = vcmp.gt.f32.partialorder %v1554_v18, 0.0  ;;  %v1655_v9 = vmul.f32 0.2, %v1554_v18  ;;  %v1558_v20 = vadd.f32 %v1557_v19, %v3408_v49  ;;  %v1686_v21 = vsel %vm1622_vm9, %v1552_v12, %v1654_v17 }
 0x2b6   : > { %v1559_v22 = vpop.f32.mrf.mxu0  ;;  %1718 = vst [vmem:[%s3417_s26 + $0x30] sm:$0xff] %v1686_v21  ;;  %v1746_v27 = vpack.c.bf16 %v1686_v21, %v1684_v15 }
 0x2b7   : > { %vm1624_vm11 = vcmp.gt.f32.partialorder %v1558_v20, 0.0  ;;  %v1656_v23 = vmul.f32 0.2, %v1558_v20  ;;  %v1560_v24 = vadd.f32 %v1559_v22, %v3411_v50  ;;  %v1687_v10 = vsel %vm1623_vm10, %v1554_v18, %v1655_v9 }
 0x2b8   : > { %v1561_v25 = vpop.f32.mrf.mxu0  ;;  %1719 = vst [vmem:[%s3417_s26 + $0x38] sm:$0xff] %v1687_v10  ;;  %v1747_v26 = vpack.c.bf16 %v1687_v10, %v1685_v8 }
 0x2b9   : > { %vm1625_vm12 = vcmp.gt.f32.partialorder %v1560_v24, 0.0  ;;  %v1657_v11 = vmul.f32 0.2, %v1560_v24  ;;  %v1562_v28 = vadd.f32 %v1561_v25, %v3408_v49  ;;  %v1688_v29 = vsel %vm1624_vm11, %v1558_v20, %v1656_v23 }
 0x2ba   : > { %v1563_v30 = vpop.f32.mrf.mxu0  ;;  %1935 = vmatprep.mubr.bf16.mxu0 %v1747_v26  ;;  %1720 = vst [vmem:[%s3417_s26 + $0x40] sm:$0xff] %v1688_v29 }
 0x2bb   : > { %vm1626_vm13 = vcmp.gt.f32.partialorder %v1562_v28, 0.0  ;;  %v1658_v31 = vmul.f32 0.2, %v1562_v28  ;;  %v1564_v32 = vadd.f32 %v1563_v30, %v3411_v50  ;;  %1936 = vmatmul.mubr.bf16.gmra.mxu0 %v1746_v27  ;;  %v1689_v33 = vsel %vm1625_vm12, %v1560_v24, %v1657_v11 }
 0x2bc   : > { %v1567_v35 = vpop.f32.mrf.mxu0  ;;  %1721 = vst [vmem:[%s3417_s26 + $0x48] sm:$0xff] %v1689_v33 }
 0x2bd   : > { %vm1627_vm14 = vcmp.gt.f32.partialorder %v1564_v32, 0.0  ;;  %v1659_v39 = vmul.f32 0.2, %v1564_v32  ;;  %v1568_v40 = vadd.f32 %v1567_v35, %v3408_v49  ;;  %v1690_v41 = vsel %vm1626_vm13, %v1562_v28, %v1658_v31 }
 0x2be   : > { %v1569_v13 = vpop.f32.mrf.mxu0  ;;  %1722 = vst [vmem:[%s3417_s26 + $0x50] sm:$0xff] %v1690_v41  ;;  %v1748_v46 = vpack.c.bf16 %v1690_v41, %v1688_v29 }
 0x2bf   : > { %vm1628_vm15 = vcmp.gt.f32.partialorder %v1568_v40, 0.0  ;;  %v1660_v42 = vmul.f32 0.2, %v1568_v40  ;;  %v1570_v14 = vadd.f32 %v1569_v13, %v3411_v50  ;;  %v1691_v43 = vsel %vm1627_vm14, %v1564_v32, %v1659_v39 }
 0x2c0   : > { %v1571_v44 = vpop.f32.mrf.mxu0  ;;  %1723 = vst [vmem:[%s3417_s26 + $0x58] sm:$0xff] %v1691_v43  ;;  %v1749_v45 = vpack.c.bf16 %v1691_v43, %v1689_v33 }
 0x2c1   : > { %v1692_v47 = vsel %vm1628_vm15, %v1568_v40, %v1660_v42  ;;  %vm1629_vm0 = vcmp.gt.f32.partialorder %v1570_v14, 0.0  ;;  %v1661_v48 = vmul.f32 0.2, %v1570_v14  ;;  %v1572_v51 = vadd.f32 %v1571_v44, %v3408_v49 }
 0x2c2   : > { %1724 = vst [vmem:[%s3417_s26 + $0x60] sm:$0xff] %v1692_v47  ;;  %v1573_v52 = vpop.f32.mrf.mxu0  ;;  %1943 = vmatprep.mubr.bf16.mxu0 %v1749_v45 }
 0x2c3   : > { %vm1630_vm1 = vcmp.gt.f32.partialorder %v1572_v51, 0.0  ;;  %v1662_v53 = vmul.f32 0.2, %v1572_v51  ;;  %v1574_v54 = vadd.f32 %v1573_v52, %v3411_v50  ;;  %1944 = vmatmul.mubr.bf16.gmra.mxu0 %v1748_v46  ;;  %v1693_v55 = vsel %vm1629_vm0, %v1570_v14, %v1661_v48 }
 0x2c4   : > { %v1577_v56 = vpop.f32.mrf.mxu0  ;;  %1725 = vst [vmem:[%s3417_s26 + $0x68] sm:$0xff] %v1693_v55 }
 0x2c5   : > { %v1694_v57 = vsel %vm1630_vm1, %v1572_v51, %v1662_v53  ;;  %vm1631_vm2 = vcmp.gt.f32.partialorder %v1574_v54, 0.0  ;;  %v1663_v58 = vmul.f32 0.2, %v1574_v54  ;;  %v1578_v59 = vadd.f32 %v1577_v56, %v3408_v49 }
 0x2c6   : > { %1726 = vst [vmem:[%s3417_s26 + $0x70] sm:$0xff] %v1694_v57  ;;  %v1579_v34 = vpop.f32.mrf.mxu0  ;;  %v1750_v37 = vpack.c.bf16 %v1694_v57, %v1692_v47 }
 0x2c7   : > { %vm1632_vm3 = vcmp.gt.f32.partialorder %v1578_v59, 0.0  ;;  %v1664_v36 = vmul.f32 0.2, %v1578_v59  ;;  %v1580_v60 = vadd.f32 %v1579_v34, %v3411_v50  ;;  %v1695_v61 = vsel %vm1631_vm2, %v1574_v54, %v1663_v58 }
 0x2c8   : > { %v1581_v62 = vpop.f32.mrf.mxu0  ;;  %1727 = vst [vmem:[%s3417_s26 + $0x78] sm:$0xff] %v1695_v61  ;;  %v1751_v38 = vpack.c.bf16 %v1695_v61, %v1693_v55 }
 0x2c9   : > { %vm1633_vm4 = vcmp.gt.f32.partialorder %v1580_v60, 0.0  ;;  %v1665_v63 = vmul.f32 0.2, %v1580_v60  ;;  %v1582_v1 = vadd.f32 %v1581_v62, %v3408_v49  ;;  %v1696_v2 = vsel %vm1632_vm3, %v1578_v59, %v1664_v36 }
 0x2ca   : > { %v1583_v0 = vpop.f32.mrf.mxu0  ;;  %1951 = vmatprep.mubr.bf16.mxu1 %v1751_v38  ;;  %1728 = vst [vmem:[%s3417_s26 + $0x80] sm:$0xff] %v1696_v2 }
 0x2cb   : > { %vm1634_vm5 = vcmp.gt.f32.partialorder %v1582_v1, 0.0  ;;  %v1666_v3 = vmul.f32 0.2, %v1582_v1  ;;  %v1584_v4 = vadd.f32 %v1583_v0, %v3411_v50  ;;  %1952 = vmatmul.mubr.bf16.vlgmr.msra.gmra.mxu1 %v1750_v37  ;;  %v1697_v5 = vsel %vm1633_vm4, %v1580_v60, %v1665_v63 }
 0x2cc   : > { %v1587_v6 = vpop.f32.mrf.mxu0  ;;  %1729 = vst [vmem:[%s3417_s26 + $0x88] sm:$0xff] %v1697_v5 }
 0x2cd   : > { %vm1635_vm6 = vcmp.gt.f32.partialorder %v1584_v4, 0.0  ;;  %v1667_v7 = vmul.f32 0.2, %v1584_v4  ;;  %v1588_v12 = vadd.f32 %v1587_v6, %v3408_v49  ;;  %v1698_v15 = vsel %vm1634_vm5, %v1582_v1, %v1666_v3 }
 0x2ce   : > { %v1589_v16 = vpop.f32.mrf.mxu0  ;;  %1730 = vst [vmem:[%s3417_s26 + $0x90] sm:$0xff] %v1698_v15  ;;  %v1752_v20 = vpack.c.bf16 %v1698_v15, %v1696_v2 }
 0x2cf   : > { %vm1636_vm7 = vcmp.gt.f32.partialorder %v1588_v12, 0.0  ;;  %v1668_v17 = vmul.f32 0.2, %v1588_v12  ;;  %v1590_v18 = vadd.f32 %v1589_v16, %v3411_v50  ;;  %v1699_v8 = vsel %vm1635_vm6, %v1584_v4, %v1667_v7 }
 0x2d0   : > { %v1591_v19 = vpop.f32.mrf.mxu0  ;;  %1731 = vst [vmem:[%s3417_s26 + $0x98] sm:$0xff] %v1699_v8  ;;  %v1753_v9 = vpack.c.bf16 %v1699_v8, %v1697_v5 }
 0x2d1   : > { %vm1637_vm8 = vcmp.gt.f32.partialorder %v1590_v18, 0.0  ;;  %v1669_v21 = vmul.f32 0.2, %v1590_v18  ;;  %v1592_v22 = vadd.f32 %v1591_v19, %v3408_v49  ;;  %v1700_v23 = vsel %vm1636_vm7, %v1588_v12, %v1668_v17 }
 0x2d2   : > { %v1593_v24 = vpop.f32.mrf.mxu0  ;;  %1959 = vmatprep.mubr.bf16.mxu1 %v1753_v9  ;;  %1732 = vst [vmem:[%s3417_s26 + $0xa0] sm:$0xff] %v1700_v23 }
 0x2d3   : > { %vm1638_vm9 = vcmp.gt.f32.partialorder %v1592_v22, 0.0  ;;  %v1670_v10 = vmul.f32 0.2, %v1592_v22  ;;  %v1594_v25 = vadd.f32 %v1593_v24, %v3411_v50  ;;  %1960 = vmatmul.mubr.bf16.gmra.mxu1 %v1752_v20  ;;  %v1701_v26 = vsel %vm1637_vm8, %v1590_v18, %v1669_v21 }
 0x2d4   : > { %v1597_v27 = vpop.f32.mrf.mxu0  ;;  %1733 = vst [vmem:[%s3417_s26 + $0xa8] sm:$0xff] %v1701_v26 }
 0x2d5   : > { %vm1639_vm10 = vcmp.gt.f32.partialorder %v1594_v25, 0.0  ;;  %v1671_v11 = vmul.f32 0.2, %v1594_v25  ;;  %v1598_v28 = vadd.f32 %v1597_v27, %v3408_v49  ;;  %v1702_v29 = vsel %vm1638_vm9, %v1592_v22, %v1670_v10 }
 0x2d6   : > { %v1599_v30 = vpop.f32.mrf.mxu0  ;;  %1734 = vst [vmem:[%s3417_s26 + $0xb0] sm:$0xff] %v1702_v29  ;;  %v1754_v40 = vpack.c.bf16 %v1702_v29, %v1700_v23 }
 0x2d7   : > { %vm1640_vm11 = vcmp.gt.f32.partialorder %v1598_v28, 0.0  ;;  %v1672_v31 = vmul.f32 0.2, %v1598_v28  ;;  %v1600_v32 = vadd.f32 %v1599_v30, %v3411_v50  ;;  %v1703_v33 = vsel %vm1639_vm10, %v1594_v25, %v1671_v11 }
 0x2d8   : > { %v1601_v35 = vpop.f32.mrf.mxu0  ;;  %1735 = vst [vmem:[%s3417_s26 + $0xb8] sm:$0xff] %v1703_v33  ;;  %v1755_v39 = vpack.c.bf16 %v1703_v33, %v1701_v26 }
 0x2d9   : > { %vm1641_vm12 = vcmp.gt.f32.partialorder %v1600_v32, 0.0  ;;  %v1673_v41 = vmul.f32 0.2, %v1600_v32  ;;  %v1602_v13 = vadd.f32 %v1601_v35, %v3408_v49  ;;  %v1704_v42 = vsel %vm1640_vm11, %v1598_v28, %v1672_v31 }
 0x2da   : > { %v1603_v14 = vpop.f32.mrf.mxu0  ;;  %1967 = vmatprep.mubr.bf16.mxu1 %v1755_v39  ;;  %1736 = vst [vmem:[%s3417_s26 + $0xc0] sm:$0xff] %v1704_v42 }
 0x2db   : > { %vm1642_vm13 = vcmp.gt.f32.partialorder %v1602_v13, 0.0  ;;  %v1674_v43 = vmul.f32 0.2, %v1602_v13  ;;  %v1604_v44 = vadd.f32 %v1603_v14, %v3411_v50  ;;  %1968 = vmatmul.mubr.bf16.gmra.mxu1 %v1754_v40  ;;  %v1705_v45 = vsel %vm1641_vm12, %v1600_v32, %v1673_v41 }
 0x2dc   : > { %v1607_v46 = vpop.f32.mrf.mxu0  ;;  %1737 = vst [vmem:[%s3417_s26 + $0xc8] sm:$0xff] %v1705_v45 }
 0x2dd   : > { %vm1643_vm14 = vcmp.gt.f32.partialorder %v1604_v44, 0.0  ;;  %v1675_v47 = vmul.f32 0.2, %v1604_v44  ;;  %v1608_v48 = vadd.f32 %v1607_v46, %v3408_v49  ;;  %v1706_v51 = vsel %vm1642_vm13, %v1602_v13, %v1674_v43 }
 0x2de   : > { %v1609_v52 = vpop.f32.mrf.mxu0  ;;  %1738 = vst [vmem:[%s3417_s26 + $0xd0] sm:$0xff] %v1706_v51  ;;  %v1756_v58 = vpack.c.bf16 %v1706_v51, %v1704_v42 }
 0x2df   : > { %vm1644_vm15 = vcmp.gt.f32.partialorder %v1608_v48, 0.0  ;;  %v1676_v53 = vmul.f32 0.2, %v1608_v48  ;;  %v1610_v54 = vadd.f32 %v1609_v52, %v3411_v50  ;;  %v1707_v55 = vsel %vm1643_vm14, %v1604_v44, %v1675_v47 }
 0x2e0   : > { %v1611_v56 = vpop.f32.mrf.mxu0  ;;  %1739 = vst [vmem:[%s3417_s26 + $0xd8] sm:$0xff] %v1707_v55  ;;  %v1757_v57 = vpack.c.bf16 %v1707_v55, %v1705_v45 }
 0x2e1   : > { %vm1645_vm0 = vcmp.gt.f32.partialorder %v1610_v54, 0.0  ;;  %v1677_v59 = vmul.f32 0.2, %v1610_v54  ;;  %v1612_v34 = vadd.f32 %v1611_v56, %v3408_v49  ;;  %v1708_v36 = vsel %vm1644_vm15, %v1608_v48, %v1676_v53 }
 0x2e2   : > { %v1613_v60 = vpop.f32.mrf.mxu0  ;;  %1975 = vmatprep.mubr.bf16.mxu1 %v1757_v57  ;;  %1740 = vst [vmem:[%s3417_s26 + $0xe0] sm:$0xff] %v1708_v36 }
 0x2e3   : > { %vm1646_vm1 = vcmp.gt.f32.partialorder %v1612_v34, 0.0  ;;  %v1678_v61 = vmul.f32 0.2, %v1612_v34  ;;  %v1614_v37 = vadd.f32 %v1613_v60, %v3411_v50  ;;  %1976 = vmatmul.mubr.bf16.gmra.mxu1 %v1756_v58  ;;  %v1709_v62 = vsel %vm1645_vm0, %v1610_v54, %v1677_v59 }
 0x2e4   : > { %1741 = vst [vmem:[%s3417_s26 + $0xe8] sm:$0xff] %v1709_v62 }
 0x2e5   : > { %vm1647_vm2 = vcmp.gt.f32.partialorder %v1614_v37, 0.0  ;;  %v1679_v38 = vmul.f32 0.2, %v1614_v37  ;;  %v1710_v63 = vsel %vm1646_vm1, %v1612_v34, %v1678_v61 }
 0x2e6   : > { %1742 = vst [vmem:[%s3417_s26 + $0xf0] sm:$0xff] %v1710_v63  ;;  %v1758_v2 = vpack.c.bf16 %v1710_v63, %v1708_v36 }
 0x2e7   : > { %v1711_v49 = vsel %vm1647_vm2, %v1614_v37, %v1679_v38 }
 0x2e8   : > { %1743 = vst [vmem:[%s3417_s26 + $0xf8] sm:$0xff] %v1711_v49  ;;  %v1759_v1 = vpack.c.bf16 %v1711_v49, %v1709_v62 }
 0x2ea   : > { %1983 = vmatprep.mubr.bf16.mxu1 %v1759_v1 }
 0x2eb   : > { %1984 = vmatmul.mubr.bf16.gmra.mxu1 %v1758_v2 }
 0x2ec   : > { %2676 = shalt.err (!%p2673_p0)
}
 0x2ed   : > { %s2677_s28 = scalar_lea.hbm %s3488_s20, 4096  ;;  %s2681_s15 = scalar_lea.hbm %s3671_s10, 8192 }
 0x2ee   : > { %p2678_p1 = scmp.ne.s32.totalorder %s3488_s20, %s2677_s28  ;;  %p2682_p4 = scmp.lt.s32.totalorder %s3488_s20, %s3671_s10 }
 0x2ef   : > { %p2683_p7 = scmp.lt.s32.totalorder %s2681_s15, %s2677_s28 }
 0x2f0   : > { %p2679_p2 = pnand %p2678_p1, %p2900_p5 }
 0x2f1   : > { %p2684_p6 = por %p2683_p7, %p2682_p4 }
 0x2f2   : > { %p2680_p3 = pneg %p2679_p2 }
 0x2f4   : > { %p2685_p8 = pnand %p2684_p6, %p2680_p3 }
 0x2f6   : > { %2688 = shalt.err (!%p2685_p8)
}
 0x2f7   : > { %s2791_s4 = smov 256   ;;  %s2792_s18 = smov 16  }
 0x2f8   : > { %2452 = dma.vmem_to_hbm [thread:$0]  (%p2900_p5), %s3497_s0, 4096, %s3488_s20, %s3499_s25, %s2791_s4, %s2791_s4, %s2792_s18  }
 0x2f9   : > { %s3529_s17 = scalar_lea.hbm %s3670_s9, %s3482_s29  ;;  %s2039_s28 = sshll.u32 %s3167_s1, 4  ;;  %s3532_s28 = int_to_ptr.vmem [resolvable:$true] %s2039_s28 }
 0x2fa   : > { %s3696_s2 = sand.u32 1, %s2775_s22   ;;  %s2689_s7 = scalar_lea.vmem %s3532_s28, 4096 }
 0x2fb   : > { %s2010_s15 = scalar_lea.sflag [#allocation4], %s3696_s2  ;;  %p2690_p9 = scmp.ne.s32.totalorder %s3532_s28, %s2689_s7 }
 0x2fc   : > { %s2793_s20 = smov [#allocation5]  }
 0x2fd   : > { %p2691_p10 = pnand %p2690_p9, %p2900_p5  ;;  %s2693_s0 = sshll.u32 %s2793_s20, 4  ;;  %s2694_s0 = int_to_ptr.vmem [resolvable:$false] %s2693_s0 }
 0x2fe   : > { %s2695_s5 = scalar_lea.vmem %s2694_s0, 8192  ;;  %p2696_p12 = scmp.lt.s32.totalorder %s3532_s28, %s2694_s0 }
 0x2ff   : > { %p2692_p11 = pneg %p2691_p10  ;;  %p2697_p13 = scmp.lt.s32.totalorder %s2695_s5, %s2689_s7 }
 0x301   : > { %p2698_p0 = por %p2697_p13, %p2696_p12 }
 0x303   : > { %p2699_p1 = pnand %p2698_p0, %p2692_p11 }
 0x305   : > { %2702 = shalt.err (!%p2699_p1)
}
 0x306   : > { %s2703_s1 = scalar_lea.hbm %s3529_s17, 4096  ;;  %s2707_s2 = scalar_lea.hbm %s3670_s9, 8192 }
 0x307   : > { %p2704_p2 = scmp.ne.s32.totalorder %s3529_s17, %s2703_s1  ;;  %p2708_p7 = scmp.lt.s32.totalorder %s3529_s17, %s3670_s9 }
 0x308   : > { %p2709_p6 = scmp.lt.s32.totalorder %s2707_s2, %s2703_s1 }
 0x309   : > { %p2705_p3 = pnand %p2704_p2, %p2900_p5 }
 0x30a   : > { %p2710_p8 = por %p2709_p6, %p2708_p7 }
 0x30b   : > { %p2706_p4 = pneg %p2705_p3 }
 0x30d   : > { %p2711_p9 = pnand %p2710_p8, %p2706_p4 }
 0x30f   : > { %2714 = shalt.err (!%p2711_p9)
}
 0x310   : > { %2451 = dma.vmem_to_hbm [thread:$0]  (%p2900_p5), %s3532_s28, 4096, %s3529_s17, %s2010_s15, %s2791_s4, %s2791_s4, %s2792_s18  }
 0x311   : > { %s3697_s7 = sshll.u32 %s3417_s26, 4  ;;  %s2794_s19 = smov [#allocation8]   ;;  %s2074_s7 = int_to_ptr.vmem [resolvable:$true] %s3697_s7 }
 0x312   : > { %s2715_s0 = scalar_lea.vmem %s2074_s7, 4096  ;;  %s2719_s5 = sshll.u32 %s2794_s19, 4  ;;  %s2720_s5 = int_to_ptr.vmem [resolvable:$false] %s2719_s5 }
 0x313   : > { %p2716_p10 = scmp.ne.s32.totalorder %s2074_s7, %s2715_s0  ;;  %s2721_s1 = scalar_lea.vmem %s2720_s5, 8192 }
 0x314   : > { %p2722_p13 = scmp.lt.s32.totalorder %s2074_s7, %s2720_s5  ;;  %p2723_p0 = scmp.lt.s32.totalorder %s2721_s1, %s2715_s0 }
 0x315   : > { %p2717_p11 = pnand %p2716_p10, %p2900_p5 }
 0x316   : > { %p2724_p1 = por %p2723_p0, %p2722_p13 }
 0x317   : > { %p2718_p12 = pneg %p2717_p11 }
 0x319   : > { %p2725_p2 = pnand %p2724_p1, %p2718_p12 }
 0x31b   : > { %2728 = shalt.err (!%p2725_p2)
}
 0x31c   : > { %s2729_s26 = scalar_lea.hbm %s3495_s3, 4096  ;;  %s2733_s15 = scalar_lea.hbm %s3672_s11, 8192 }
 0x31d   : > { %p2730_p3 = scmp.ne.s32.totalorder %s3495_s3, %s2729_s26  ;;  %p2734_p6 = scmp.lt.s32.totalorder %s3495_s3, %s3672_s11 }
 0x31e   : > { %p2735_p8 = scmp.lt.s32.totalorder %s2733_s15, %s2729_s26 }
 0x31f   : > { %p2731_p4 = pnand %p2730_p3, %p2900_p5 }
 0x320   : > { %p2736_p9 = por %p2735_p8, %p2734_p6 }
 0x321   : > { %p2732_p7 = pneg %p2731_p4 }
 0x323   : > { %p2737_p10 = pnand %p2736_p9, %p2732_p7 }
 0x325   : > { %2740 = shalt.err (!%p2737_p10)
}
 0x326   : > { %2453 = dma.vmem_to_hbm [thread:$0]  (%p2900_p5), %s2074_s7, 4096, %s3495_s3, %s3499_s25, %s2791_s4, %s2791_s4, %s2792_s18   ;;  %vm1992_vm3 = vcmask 261120  }
 0x327   : > { %v3585_v0 = vld [vmem:[%s3669_s8] ss:$0 sm:$0xff]  ;;  %s3698_s0 = sshll.u32 %s3706_s16, 3 }
 0x328   : > { %s3592_s13 = scalar_lea.vmem %s3673_s12, %s3698_s0 }
 0x373   : > { %v2383_v50 = vpop.f32.mrf.mxu0 }
 0x375   : > { %v2384_v3 = vpop.f32.mrf.mxu0 }
 0x376   : > { %v2385_v4 = vadd.f32 %v2384_v3, %v2383_v50 }
 0x377   : > { %v2386_v5 = vpop.f32.mrf.mxu0 }
 0x378   : > { %v1930_v6 = vadd.f32 %v2385_v4, %v3585_v0 }
 0x379   : > { %v2387_v7 = vpop.f32.mrf.mxu0 }
 0x37a   : > { %1993 = vst.msk [vmem:[%s3592_s13] sm:$0xff] %vm1992_vm3, %v1930_v6  ;;  %v2388_v12 = vadd.f32 %v2387_v7, %v2386_v5 }
 0x37b   : > { %v2389_v15 = vpop.f32.mrf.mxu0 }
 0x37c   : > { %v1933_v16 = vadd.f32 %v2388_v12, %v3585_v0 }
 0x37d   : > { %v2390_v17 = vpop.f32.mrf.mxu0 }
 0x37e   : > { %1994 = vst.msk [vmem:[%s3592_s13 + $0x8] sm:$0xff] %vm1992_vm3, %v1933_v16  ;;  %v2391_v18 = vadd.f32 %v2390_v17, %v2389_v15 }
 0x37f   : > { %v2392_v8 = vpop.f32.mrf.mxu0 }
 0x380   : > { %v1938_v19 = vadd.f32 %v2391_v18, %v3585_v0 }
 0x381   : > { %v2393_v9 = vpop.f32.mrf.mxu0 }
 0x382   : > { %1995 = vst.msk [vmem:[%s3592_s13 + $0x10] sm:$0xff] %vm1992_vm3, %v1938_v19  ;;  %v2394_v20 = vadd.f32 %v2393_v9, %v2392_v8 }
 0x383   : > { %v2395_v21 = vpop.f32.mrf.mxu0 }
 0x384   : > { %v1941_v22 = vadd.f32 %v2394_v20, %v3585_v0 }
 0x385   : > { %v2396_v23 = vpop.f32.mrf.mxu0 }
 0x386   : > { %1996 = vst.msk [vmem:[%s3592_s13 + $0x18] sm:$0xff] %vm1992_vm3, %v1941_v22  ;;  %v2397_v24 = vadd.f32 %v2396_v23, %v2395_v21 }
 0x387   : > { %v2398_v10 = vpop.f32.mrf.mxu0 }
 0x388   : > { %v1946_v25 = vadd.f32 %v2397_v24, %v3585_v0 }
 0x389   : > { %v2399_v26 = vpop.f32.mrf.mxu0 }
 0x38a   : > { %1997 = vst.msk [vmem:[%s3592_s13 + $0x20] sm:$0xff] %vm1992_vm3, %v1946_v25  ;;  %v2400_v27 = vadd.f32 %v2399_v26, %v2398_v10 }
 0x38b   : > { %v2401_v11 = vpop.f32.mrf.mxu1 }
 0x38c   : > { %v1949_v28 = vadd.f32 %v2400_v27, %v3585_v0 }
 0x38d   : > { %v2402_v29 = vpop.f32.mrf.mxu1 }
 0x38e   : > { %1998 = vst.msk [vmem:[%s3592_s13 + $0x28] sm:$0xff] %vm1992_vm3, %v1949_v28  ;;  %v2403_v30 = vadd.f32 %v2402_v29, %v2401_v11 }
 0x38f   : > { %v2404_v31 = vpop.f32.mrf.mxu1 }
 0x390   : > { %v1954_v32 = vadd.f32 %v2403_v30, %v3585_v0 }
 0x391   : > { %v2405_v33 = vpop.f32.mrf.mxu1 }
 0x392   : > { %1999 = vst.msk [vmem:[%s3592_s13 + $0x30] sm:$0xff] %vm1992_vm3, %v1954_v32  ;;  %v2406_v35 = vadd.f32 %v2405_v33, %v2404_v31 }
 0x393   : > { %v2407_v39 = vpop.f32.mrf.mxu1 }
 0x394   : > { %v1957_v40 = vadd.f32 %v2406_v35, %v3585_v0 }
 0x395   : > { %v2408_v41 = vpop.f32.mrf.mxu1 }
 0x396   : > { %2000 = vst.msk [vmem:[%s3592_s13 + $0x38] sm:$0xff] %vm1992_vm3, %v1957_v40  ;;  %v2409_v13 = vadd.f32 %v2408_v41, %v2407_v39 }
 0x397   : > { %v2410_v42 = vpop.f32.mrf.mxu1 }
 0x398   : > { %v1962_v14 = vadd.f32 %v2409_v13, %v3585_v0 }
 0x399   : > { %v2411_v43 = vpop.f32.mrf.mxu1 }
 0x39a   : > { %2001 = vst.msk [vmem:[%s3592_s13 + $0x40] sm:$0xff] %vm1992_vm3, %v1962_v14  ;;  %v2412_v44 = vadd.f32 %v2411_v43, %v2410_v42 }
 0x39b   : > { %v2413_v45 = vpop.f32.mrf.mxu1 }
 0x39c   : > { %v1965_v46 = vadd.f32 %v2412_v44, %v3585_v0 }
 0x39d   : > { %v2414_v47 = vpop.f32.mrf.mxu1 }
 0x39e   : > { %2002 = vst.msk [vmem:[%s3592_s13 + $0x48] sm:$0xff] %vm1992_vm3, %v1965_v46  ;;  %v2415_v48 = vadd.f32 %v2414_v47, %v2413_v45 }
 0x39f   : > { %v2416_v51 = vpop.f32.mrf.mxu1 }
 0x3a0   : > { %v1970_v52 = vadd.f32 %v2415_v48, %v3585_v0 }
 0x3a1   : > { %v2417_v53 = vpop.f32.mrf.mxu1 }
 0x3a2   : > { %2003 = vst.msk [vmem:[%s3592_s13 + $0x50] sm:$0xff] %vm1992_vm3, %v1970_v52  ;;  %v2418_v54 = vadd.f32 %v2417_v53, %v2416_v51 }
 0x3a3   : > { %v2419_v55 = vpop.f32.mrf.mxu1 }
 0x3a4   : > { %v1973_v56 = vadd.f32 %v2418_v54, %v3585_v0 }
 0x3a5   : > { %v2420_v57 = vpop.f32.mrf.mxu1 }
 0x3a6   : > { %2004 = vst.msk [vmem:[%s3592_s13 + $0x58] sm:$0xff] %vm1992_vm3, %v1973_v56  ;;  %v2421_v58 = vadd.f32 %v2420_v57, %v2419_v55 }
 0x3a7   : > { %v2422_v59 = vpop.f32.mrf.mxu1 }
 0x3a8   : > { %v1978_v34 = vadd.f32 %v2421_v58, %v3585_v0 }
 0x3a9   : > { %v2423_v36 = vpop.f32.mrf.mxu1 }
 0x3aa   : > { %2005 = vst.msk [vmem:[%s3592_s13 + $0x60] sm:$0xff] %vm1992_vm3, %v1978_v34  ;;  %v2424_v60 = vadd.f32 %v2423_v36, %v2422_v59 }
 0x3ab   : > { %v2425_v61 = vpop.f32.mrf.mxu1 }
 0x3ac   : > { %v1981_v37 = vadd.f32 %v2424_v60, %v3585_v0 }
 0x3ad   : > { %v2426_v62 = vpop.f32.mrf.mxu1 }
 0x3ae   : > { %2006 = vst.msk [vmem:[%s3592_s13 + $0x68] sm:$0xff] %vm1992_vm3, %v1981_v37  ;;  %v2427_v38 = vadd.f32 %v2426_v62, %v2425_v61 }
 0x3af   : > { %v2428_v63 = vpop.f32.mrf.mxu1 }
 0x3b0   : > { %v1986_v49 = vadd.f32 %v2427_v38, %v3585_v0 }
 0x3b1   : > { %v2429_v1 = vpop.f32.mrf.mxu1 }
 0x3b2   : > { %2007 = vst.msk [vmem:[%s3592_s13 + $0x70] sm:$0xff] %vm1992_vm3, %v1986_v49  ;;  %v2430_v2 = vadd.f32 %v2429_v1, %v2428_v63 }
 0x3b4   : > { %v1989_v50 = vadd.f32 %v2430_v2, %v3585_v0 }
 0x3b6   : > { %2008 = vst.msk [vmem:[%s3592_s13 + $0x78] sm:$0xff] %vm1992_vm3, %v1989_v50 }
 0x3b7 PF: > { %p2473_p5 = scmp.ge.s32.totalorder %s2783_s24, 2  ;;  %s2092_s16 = sand.u32 1, %s2771_s21  }
 0x3b8   : > { %p3699_p11 = scmp.ne.s32.totalorder %s3686_s14, 0  ;;  %s2093_s3 = scalar_lea.sflag [#allocation4], %s2092_s16 }
 0x3ba   : > { %p2462_p12 = pnand %p2473_p5, %p3699_p11 }
 0x3bc   : > { %p2463_p13 = pneg %p2462_p12 }
 0x3be   : > { %2762 = dma.done.wait (%p2463_p13), %s2093_s3, 4096  }
 0x3bf   : > { %2764 = vsyncadd (%p2463_p13), %s2093_s3, 4294963200  ;;  %s3700_s25 = sadd.s32 4294967294, %s2783_s24  }
 0x3c0   : > { %s2101_s4 = sand.u32 1, %s3700_s25  }
 0x3c1   : > { %s2102_s18 = scalar_lea.sflag [#allocation7], %s2101_s4 }
 0x3c2   : > { %2766 = dma.done.wait (%p2463_p13), %s2102_s18, 8192  }
 0x3c3   : > { %2768 = vsyncadd (%p2463_p13), %s2102_s18, 4294959104  ;;  %p27_p0 = scmp.ge.s32.totalorder %s2885_s27, 4   ;;  %s3701_s21 = smov %s2775_s22 }
 0x3c4   : > { %s3702_s22 = smov %s2779_s23  ;;  %s3703_s23 = smov %s2898_s30 }
 0x3c5   : > { %s3704_s24 = smov %s2885_s27  ;;  %29 = sbr.rel (!%p27_p0) target bundleno = 15 (0xf), region = 140 }
 0x3ca   :  { %2124 = vsyncpa [#allocation3], 1 }
 0x3cb   :  { %2126 = vsyncpa [#allocation3 + $0x1], 1 }
 0x3cc   :  { %2127 = vsyncpa [#allocation4], 1 }
 0x3cd   :  { %2129 = vsyncpa [#allocation4 + $0x1], 1 }
 0x3ce   :  { %2130 = vsyncpa [#allocation7], 1 }
 0x3cf   :  { %2132 = vsyncpa [#allocation7 + $0x1], 1 }

</bundles_post_ra>
